<compile_context>
chip_gen: v5e
topology: v5e:2x2
jax: 0.10.0
libtpu: 0.0.40
codegen_flags: <defaults>
</compile_context>

<pallas_src>
import functools

import jax
import jax.numpy as jnp
import numpy as np
from jax import lax
from jax.experimental import pallas as pl
from jax.experimental.pallas import tpu as pltpu


# ----------------------------- Pallas kernel --------------------------------
def caa_kernel(x_ref, w1_ref, w2_ref, m_ref, ht_ref, vt_ref, b_ref, o_ref, *, W):
    """One batch group.  Slab layout (C_pad, Q_pad), lane = b_local*H*W + h*W + w."""
    x = x_ref[0]                                   # (Cp, Qp) f32
    qp = x.shape[1]

    def shift(v, off):
        # shifted[:, l] = v[:, (l + off) % qp]; wrapped lanes are masked out.
        if off == 0:
            return v
        return pltpu.roll(v, shift=(-off) % qp, axis=1)

    # ---- 7x7 avg pool, separable (zero pad, /49).
    # mask rows 0..6: H taps (1/7 where h+d in range); rows 7..13: W taps.
    acc = x * m_ref[3:4, :]
    for d in range(-3, 4):
        if d:
            acc = acc + shift(x, d * W) * m_ref[d + 3:d + 4, :]
    xh = acc
    acc = xh * m_ref[10:11, :]
    for d in range(-3, 4):
        if d:
            acc = acc + shift(xh, d) * m_ref[d + 10:d + 11, :]

    # ---- conv1: 1x1 channel mix (BN scale folded into rows of w1) + bias + SiLU
    y = jnp.dot(w1_ref[...], acc.astype(jnp.bfloat16),
                preferred_element_type=jnp.float32)
    y = y + b_ref[:, 0:1]
    y = y * jax.nn.sigmoid(y)

    # ---- h_conv: depthwise (1,11) along W.  mask rows 14..24, taps (Cp, 11).
    acc = y * m_ref[19:20, :] * ht_ref[:, 5:6]
    for d in range(-5, 6):
        if d:
            acc = acc + shift(y, d) * m_ref[d + 19:d + 20, :] * ht_ref[:, d + 5:d + 6]
    y = acc + b_ref[:, 1:2]

    # ---- v_conv: depthwise (11,1) along H.  mask rows 25..35, taps (Cp, 11).
    acc = y * m_ref[30:31, :] * vt_ref[:, 5:6]
    for d in range(-5, 6):
        if d:
            acc = acc + shift(y, d * W) * m_ref[d + 30:d + 31, :] * vt_ref[:, d + 5:d + 6]
    y = acc + b_ref[:, 2:3]

    # ---- conv2: 1x1 channel mix (BN folded) + bias + SiLU, then final Sigmoid
    y = jnp.dot(w2_ref[...], y.astype(jnp.bfloat16),
                preferred_element_type=jnp.float32)
    y = y + b_ref[:, 3:4]
    y = y * jax.nn.sigmoid(y)
    o_ref[0] = jax.nn.sigmoid(y)


# ------------------------------ glue (plain JAX) ----------------------------
def _ceil_to(x, m):
    return ((x + m - 1) // m) * m


def _pick_batch_block(N, H, W, max_lanes=4096, min_grid=2):
    # Batch samples per grid step: keep >= min_grid steps (v7x has 2 TCs),
    # keep the lane width Gb*H*W modest (VMEM), otherwise as large as possible.
    best = 1
    for gb in range(1, N + 1):
        if N % gb:
            continue
        if gb * H * W > max_lanes:
            continue
        if N // gb < min(min_grid, N):
            continue
        best = gb
    return best


def fold_bn(gamma, beta, rmean, rvar, eps):
    scale = gamma / jnp.sqrt(rvar + eps)
    shift = beta - rmean * scale
    return scale.astype(jnp.float32), shift.astype(jnp.float32)


def caa_forward(x, p, eps=1e-3):
    N, C, H, W = x.shape
    Gb = _pick_batch_block(N, H, W)
    G = N // Gb
    Q = Gb * H * W
    Qp = max(_ceil_to(Q, 128), 128)          # lane-dense, unmasked stores
    Cp = max(_ceil_to(C, 16), 16)            # aligned sublanes for bf16 matmuls

    # relayout: (N,C,H,W) -> (G, Cp, Qp); lane = b_local*H*W + h*W + w
    xs = x.reshape(G, Gb, C, H, W).transpose(0, 2, 1, 3, 4).reshape(G, C, Q)
    xs = jnp.pad(xs, ((0, 0), (0, Cp - C), (0, Qp - Q))).astype(jnp.float32)

    # per-lane zero-padding masks for the separable pool (value 1/7) and the
    # two depthwise convs (value 1.0).  Boundary masks also stop roll wraps
    # across sample / pad boundaries.
    l = np.arange(Qp)
    w_idx = l % W
    h_idx = (l // W) % H
    rows = []
    for d in range(-3, 4):                                   # pool along H
        rows.append(((h_idx + d >= 0) & (h_idx + d < H)) / 7.0)
    for d in range(-3, 4):                                   # pool along W
        rows.append(((w_idx + d >= 0) & (w_idx + d < W)) / 7.0)
    for d in range(-5, 6):                                   # h_conv along W
        rows.append(((w_idx + d >= 0) & (w_idx + d < W)) * 1.0)
    for d in range(-5, 6):                                   # v_conv along H
        rows.append(((h_idx + d >= 0) & (h_idx + d < H)) * 1.0)
    lane_masks = jnp.asarray(np.stack(rows).astype(np.float32))   # (36, Qp)

    # weights: BN scale folded into the 1x1 conv rows; bf16 MXU operands
    g1, b1 = fold_bn(p["gamma1"], p["beta1"], p["rm1"], p["rv1"], eps)
    g2, b2 = fold_bn(p["gamma2"], p["beta2"], p["rm2"], p["rv2"], eps)

    def pad_cc(w):
        return jnp.pad(w, ((0, Cp - C), (0, Cp - C)))

    def pad_c(v):
        return jnp.pad(v.astype(jnp.float32), ((0, Cp - C),))

    w1f = pad_cc(g1[:, None] * p["w1"].astype(jnp.float32)).astype(jnp.bfloat16)
    w2f = pad_cc(g2[:, None] * p["w2"].astype(jnp.float32)).astype(jnp.bfloat16)
    ht = jnp.pad(p["hw"].astype(jnp.float32), ((0, Cp - C), (0, 0)))   # (Cp, 11)
    vt = jnp.pad(p["vw"].astype(jnp.float32), ((0, Cp - C), (0, 0)))   # (Cp, 11)
    bias = jnp.stack([pad_c(b1), pad_c(p["hb"]), pad_c(p["vb"]), pad_c(b2)],
                     axis=1)                                           # (Cp, 4)

    # explicit VMEM budget: double-buffered in/out slabs + constants + margin
    slab_bytes = Cp * Qp * 4
    const_bytes = 2 * Cp * Cp * 2 + 36 * Qp * 4 + 2 * Cp * 11 * 4 + Cp * 4 * 4
    est = 4 * slab_bytes + 2 * const_bytes + (4 << 20)
    vmem_limit = int(min(max(est, 32 << 20), 64 << 20))   # v7x-safe cap

    const2 = lambda g: (0, 0)
    fn = pl.pallas_call(
        functools.partial(caa_kernel, W=W),
        out_shape=jax.ShapeDtypeStruct((G, Cp, Qp), jnp.float32),
        grid=(G,),
        in_specs=[
            pl.BlockSpec((1, Cp, Qp), lambda g: (g, 0, 0)),   # x slab
            pl.BlockSpec((Cp, Cp), const2),                   # conv1 weights (bf16)
            pl.BlockSpec((Cp, Cp), const2),                   # conv2 weights (bf16)
            pl.BlockSpec((36, Qp), const2),                   # lane masks
            pl.BlockSpec((Cp, 11), const2),                   # h_conv taps
            pl.BlockSpec((Cp, 11), const2),                   # v_conv taps
            pl.BlockSpec((Cp, 4), const2),                    # bias columns
        ],
        out_specs=pl.BlockSpec((1, Cp, Qp), lambda g: (g, 0, 0)),
        compiler_params=pltpu.CompilerParams(
            dimension_semantics=("parallel",),
            vmem_limit_bytes=vmem_limit),
    )
    out = fn(xs, w1f, w2f, lane_masks, ht, vt, bias)
    out = out[:, :C, :Q].reshape(G, C, Gb, H, W).transpose(0, 2, 1, 3, 4)
    return out.reshape(N, C, H, W)


# ------------------------- pure-JAX reference (check) -----------------------
def _conv_nchw(x, w, pad_h, pad_w, groups=1):
    return lax.conv_general_dilated(
        x, w, window_strides=(1, 1),
        padding=((pad_h, pad_h), (pad_w, pad_w)),
        dimension_numbers=("NCHW", "OIHW", "NCHW"),
        feature_group_count=groups,
        precision=lax.Precision.HIGHEST)


def caa_reference(x, p, eps=1e-3):
    N, C, H, W = x.shape
    g1, b1 = fold_bn(p["gamma1"], p["beta1"], p["rm1"], p["rv1"], eps)
    g2, b2 = fold_bn(p["gamma2"], p["beta2"], p["rm2"], p["rv2"], eps)
    pool_w = jnp.tile(jnp.ones((1, 1, 7, 7), jnp.float32) / 49.0, (C, 1, 1, 1))
    y = _conv_nchw(x, pool_w, 3, 3, groups=C)                         # avg pool
    y = _conv_nchw(y, p["w1"][:, :, None, None], 0, 0)                # conv1
    y = y * g1[None, :, None, None] + b1[None, :, None, None]
    y = y * jax.nn.sigmoid(y)
    y = _conv_nchw(y, p["hw"][:, None, None, :], 0, 5, groups=C)      # h_conv
    y = y + p["hb"][None, :, None, None]
    y = _conv_nchw(y, p["vw"][:, None, :, None], 5, 0, groups=C)      # v_conv
    y = y + p["vb"][None, :, None, None]
    y = _conv_nchw(y, p["w2"][:, :, None, None], 0, 0)                # conv2
    y = y * g2[None, :, None, None] + b2[None, :, None, None]
    y = y * jax.nn.sigmoid(y)
    return jax.nn.sigmoid(y)


# --------------------------------- params -----------------------------------
def init_params(key, C):
    ks = jax.random.split(key, 16)
    f32 = jnp.float32
    return {
        "w1": jax.random.normal(ks[0], (C, C), f32) * 0.5,
        "gamma1": 1.0 + 0.1 * jax.random.normal(ks[1], (C,), f32),
        "beta1": 0.1 * jax.random.normal(ks[2], (C,), f32),
        "rm1": 0.1 * jax.random.normal(ks[3], (C,), f32),
        "rv1": jax.random.uniform(ks[4], (C,), f32, 0.5, 1.5),
        "hw": 0.3 * jax.random.normal(ks[5], (C, 11), f32),
        "hb": 0.1 * jax.random.normal(ks[6], (C,), f32),
        "vw": 0.3 * jax.random.normal(ks[7], (C, 11), f32),
        "vb": 0.1 * jax.random.normal(ks[8], (C,), f32),
        "w2": jax.random.normal(ks[9], (C, C), f32) * 0.5,
        "gamma2": 1.0 + 0.1 * jax.random.normal(ks[10], (C,), f32),
        "beta2": 0.1 * jax.random.normal(ks[11], (C,), f32),
        "rm2": 0.1 * jax.random.normal(ks[12], (C,), f32),
        "rv2": jax.random.uniform(ks[13], (C,), f32, 0.5, 1.5),
    }


if __name__ == "__main__":
    key = jax.random.PRNGKey(0)
    kx, kp = jax.random.split(key)
    N, C, H, W = 2, 4, 16, 16
    x = jax.random.normal(kx, (N, C, H, W), jnp.float32)
    params = init_params(kp, C)

    out = caa_forward(x, params)
    out = jax.block_until_ready(out)

    ref = caa_reference(x, params)
    # bf16 MXU operands (f32 accumulation) -> slightly looser tolerance.
    np.testing.assert_allclose(np.asarray(out), np.asarray(ref),
                               atol=1e-2, rtol=1e-2)
    print("KERNEL_OK")
</pallas_src>

<mosaic_0001>
module attributes {stable_mosaic.version = 11 : i64} {
  func.func @caa_kernel(%arg0: i32, %arg1: memref<1x16x256xf32, #tpu.memory_space<vmem>>, %arg2: memref<16x16xbf16, #tpu.memory_space<vmem>>, %arg3: memref<16x16xbf16, #tpu.memory_space<vmem>>, %arg4: memref<36x256xf32, #tpu.memory_space<vmem>>, %arg5: memref<16x11xf32, #tpu.memory_space<vmem>>, %arg6: memref<16x11xf32, #tpu.memory_space<vmem>>, %arg7: memref<16x4xf32, #tpu.memory_space<vmem>>, %arg8: memref<1x16x256xf32, #tpu.memory_space<vmem>>) attributes {dimension_semantics = [#tpu.dimension_semantics<parallel>], iteration_bounds = array<i64: 2>, scalar_prefetch = 0 : i64, scratch_operands = 0 : i64, tpu.core_type = #tpu.core_type<tc>, window_params = [{transform_indices = @transform_0, window_bounds = array<i64: 1, 16, 256>}, {pipeline_mode = #tpu.pipeline_mode<synchronous>, transform_indices = @transform_1, window_bounds = array<i64: 16, 16>}, {pipeline_mode = #tpu.pipeline_mode<synchronous>, transform_indices = @transform_2, window_bounds = array<i64: 16, 16>}, {pipeline_mode = #tpu.pipeline_mode<synchronous>, transform_indices = @transform_3, window_bounds = array<i64: 36, 256>}, {pipeline_mode = #tpu.pipeline_mode<synchronous>, transform_indices = @transform_4, window_bounds = array<i64: 16, 11>}, {pipeline_mode = #tpu.pipeline_mode<synchronous>, transform_indices = @transform_5, window_bounds = array<i64: 16, 11>}, {pipeline_mode = #tpu.pipeline_mode<synchronous>, transform_indices = @transform_6, window_bounds = array<i64: 16, 4>}, {transform_indices = @transform_7, window_bounds = array<i64: 1, 16, 256>}]} {
    %c0 = arith.constant 0 : index
    %c0_0 = arith.constant 0 : index
    %c0_1 = arith.constant 0 : index
    %0 = vector.load %arg1[%c0, %c0_0, %c0_1] : memref<1x16x256xf32, #tpu.memory_space<vmem>>, vector<1x16x256xf32>
    %1 = vector.shape_cast %0 : vector<1x16x256xf32> to vector<16x256xf32>
    %c3 = arith.constant 3 : index
    %c0_2 = arith.constant 0 : index
    %2 = vector.load %arg4[%c3, %c0_2] : memref<36x256xf32, #tpu.memory_space<vmem>>, vector<1x256xf32>
    %3 = vector.broadcast %2 : vector<1x256xf32> to vector<16x256xf32>
    %4 = arith.mulf %1, %3 : vector<16x256xf32>
    %c48_i32 = arith.constant 48 : i32
    %5 = tpu.dynamic_rotate %1 by %c48_i32 dim 1 : vector<16x256xf32>, i32 -> vector<16x256xf32>
    %c0_3 = arith.constant 0 : index
    %c0_4 = arith.constant 0 : index
    %6 = vector.load %arg4[%c0_3, %c0_4] : memref<36x256xf32, #tpu.memory_space<vmem>>, vector<1x256xf32>
    %7 = vector.broadcast %6 : vector<1x256xf32> to vector<16x256xf32>
    %8 = arith.mulf %5, %7 : vector<16x256xf32>
    %9 = arith.addf %4, %8 : vector<16x256xf32>
    %c32_i32 = arith.constant 32 : i32
    %10 = tpu.dynamic_rotate %1 by %c32_i32 dim 1 : vector<16x256xf32>, i32 -> vector<16x256xf32>
    %c1 = arith.constant 1 : index
    %c0_5 = arith.constant 0 : index
    %11 = vector.load %arg4[%c1, %c0_5] : memref<36x256xf32, #tpu.memory_space<vmem>>, vector<1x256xf32>
    %12 = vector.broadcast %11 : vector<1x256xf32> to vector<16x256xf32>
    %13 = arith.mulf %10, %12 : vector<16x256xf32>
    %14 = arith.addf %9, %13 : vector<16x256xf32>
    %c16_i32 = arith.constant 16 : i32
    %15 = tpu.dynamic_rotate %1 by %c16_i32 dim 1 : vector<16x256xf32>, i32 -> vector<16x256xf32>
    %c2 = arith.constant 2 : index
    %c0_6 = arith.constant 0 : index
    %16 = vector.load %arg4[%c2, %c0_6] : memref<36x256xf32, #tpu.memory_space<vmem>>, vector<1x256xf32>
    %17 = vector.broadcast %16 : vector<1x256xf32> to vector<16x256xf32>
    %18 = arith.mulf %15, %17 : vector<16x256xf32>
    %19 = arith.addf %14, %18 : vector<16x256xf32>
    %c240_i32 = arith.constant 240 : i32
    %20 = tpu.dynamic_rotate %1 by %c240_i32 dim 1 : vector<16x256xf32>, i32 -> vector<16x256xf32>
    %c4 = arith.constant 4 : index
    %c0_7 = arith.constant 0 : index
    %21 = vector.load %arg4[%c4, %c0_7] : memref<36x256xf32, #tpu.memory_space<vmem>>, vector<1x256xf32>
    %22 = vector.broadcast %21 : vector<1x256xf32> to vector<16x256xf32>
    %23 = arith.mulf %20, %22 : vector<16x256xf32>
    %24 = arith.addf %19, %23 : vector<16x256xf32>
    %c224_i32 = arith.constant 224 : i32
    %25 = tpu.dynamic_rotate %1 by %c224_i32 dim 1 : vector<16x256xf32>, i32 -> vector<16x256xf32>
    %c5 = arith.constant 5 : index
    %c0_8 = arith.constant 0 : index
    %26 = vector.load %arg4[%c5, %c0_8] : memref<36x256xf32, #tpu.memory_space<vmem>>, vector<1x256xf32>
    %27 = vector.broadcast %26 : vector<1x256xf32> to vector<16x256xf32>
    %28 = arith.mulf %25, %27 : vector<16x256xf32>
    %29 = arith.addf %24, %28 : vector<16x256xf32>
    %c208_i32 = arith.constant 208 : i32
    %30 = tpu.dynamic_rotate %1 by %c208_i32 dim 1 : vector<16x256xf32>, i32 -> vector<16x256xf32>
    %c6 = arith.constant 6 : index
    %c0_9 = arith.constant 0 : index
    %31 = vector.load %arg4[%c6, %c0_9] : memref<36x256xf32, #tpu.memory_space<vmem>>, vector<1x256xf32>
    %32 = vector.broadcast %31 : vector<1x256xf32> to vector<16x256xf32>
    %33 = arith.mulf %30, %32 : vector<16x256xf32>
    %34 = arith.addf %29, %33 : vector<16x256xf32>
    %c10 = arith.constant 10 : index
    %c0_10 = arith.constant 0 : index
    %35 = vector.load %arg4[%c10, %c0_10] : memref<36x256xf32, #tpu.memory_space<vmem>>, vector<1x256xf32>
    %36 = vector.broadcast %35 : vector<1x256xf32> to vector<16x256xf32>
    %37 = arith.mulf %34, %36 : vector<16x256xf32>
    %c3_i32 = arith.constant 3 : i32
    %38 = tpu.dynamic_rotate %34 by %c3_i32 dim 1 : vector<16x256xf32>, i32 -> vector<16x256xf32>
    %c7 = arith.constant 7 : index
    %c0_11 = arith.constant 0 : index
    %39 = vector.load %arg4[%c7, %c0_11] : memref<36x256xf32, #tpu.memory_space<vmem>>, vector<1x256xf32>
    %40 = vector.broadcast %39 : vector<1x256xf32> to vector<16x256xf32>
    %41 = arith.mulf %38, %40 : vector<16x256xf32>
    %42 = arith.addf %37, %41 : vector<16x256xf32>
    %c2_i32 = arith.constant 2 : i32
    %43 = tpu.dynamic_rotate %34 by %c2_i32 dim 1 : vector<16x256xf32>, i32 -> vector<16x256xf32>
    %c8 = arith.constant 8 : index
    %c0_12 = arith.constant 0 : index
    %44 = vector.load %arg4[%c8, %c0_12] : memref<36x256xf32, #tpu.memory_space<vmem>>, vector<1x256xf32>
    %45 = vector.broadcast %44 : vector<1x256xf32> to vector<16x256xf32>
    %46 = arith.mulf %43, %45 : vector<16x256xf32>
    %47 = arith.addf %42, %46 : vector<16x256xf32>
    %c1_i32 = arith.constant 1 : i32
    %48 = tpu.dynamic_rotate %34 by %c1_i32 dim 1 : vector<16x256xf32>, i32 -> vector<16x256xf32>
    %c9 = arith.constant 9 : index
    %c0_13 = arith.constant 0 : index
    %49 = vector.load %arg4[%c9, %c0_13] : memref<36x256xf32, #tpu.memory_space<vmem>>, vector<1x256xf32>
    %50 = vector.broadcast %49 : vector<1x256xf32> to vector<16x256xf32>
    %51 = arith.mulf %48, %50 : vector<16x256xf32>
    %52 = arith.addf %47, %51 : vector<16x256xf32>
    %c255_i32 = arith.constant 255 : i32
    %53 = tpu.dynamic_rotate %34 by %c255_i32 dim 1 : vector<16x256xf32>, i32 -> vector<16x256xf32>
    %c11 = arith.constant 11 : index
    %c0_14 = arith.constant 0 : index
    %54 = vector.load %arg4[%c11, %c0_14] : memref<36x256xf32, #tpu.memory_space<vmem>>, vector<1x256xf32>
    %55 = vector.broadcast %54 : vector<1x256xf32> to vector<16x256xf32>
    %56 = arith.mulf %53, %55 : vector<16x256xf32>
    %57 = arith.addf %52, %56 : vector<16x256xf32>
    %c254_i32 = arith.constant 254 : i32
    %58 = tpu.dynamic_rotate %34 by %c254_i32 dim 1 : vector<16x256xf32>, i32 -> vector<16x256xf32>
    %c12 = arith.constant 12 : index
    %c0_15 = arith.constant 0 : index
    %59 = vector.load %arg4[%c12, %c0_15] : memref<36x256xf32, #tpu.memory_space<vmem>>, vector<1x256xf32>
    %60 = vector.broadcast %59 : vector<1x256xf32> to vector<16x256xf32>
    %61 = arith.mulf %58, %60 : vector<16x256xf32>
    %62 = arith.addf %57, %61 : vector<16x256xf32>
    %c253_i32 = arith.constant 253 : i32
    %63 = tpu.dynamic_rotate %34 by %c253_i32 dim 1 : vector<16x256xf32>, i32 -> vector<16x256xf32>
    %c13 = arith.constant 13 : index
    %c0_16 = arith.constant 0 : index
    %64 = vector.load %arg4[%c13, %c0_16] : memref<36x256xf32, #tpu.memory_space<vmem>>, vector<1x256xf32>
    %65 = vector.broadcast %64 : vector<1x256xf32> to vector<16x256xf32>
    %66 = arith.mulf %63, %65 : vector<16x256xf32>
    %67 = arith.addf %62, %66 : vector<16x256xf32>
    %c0_17 = arith.constant 0 : index
    %c0_18 = arith.constant 0 : index
    %68 = vector.load %arg2[%c0_17, %c0_18] : memref<16x16xbf16, #tpu.memory_space<vmem>>, vector<16x16xbf16>
    %69 = arith.truncf %67 : vector<16x256xf32> to vector<16x256xbf16>
    %cst = arith.constant dense<0.000000e+00> : vector<16x256xf32>
    %70 = tpu.matmul %68, %69, %cst {dimension_numbers = #tpu.dot_dimension_numbers<[1], [0], [0], [1], [0, 0, 1, 1], [], []>} : vector<16x16xbf16>, vector<16x256xbf16>, vector<16x256xf32> -> vector<16x256xf32>
    %c0_19 = arith.constant 0 : index
    %c0_20 = arith.constant 0 : index
    %71 = vector.load %arg7[%c0_19, %c0_20] : memref<16x4xf32, #tpu.memory_space<vmem>>, vector<16x1xf32>
    %72 = vector.broadcast %71 : vector<16x1xf32> to vector<16x256xf32>
    %73 = arith.addf %70, %72 : vector<16x256xf32>
    %74 = arith.negf %73 : vector<16x256xf32>
    %75 = math.exp %74 : vector<16x256xf32>
    %cst_21 = arith.constant 1.000000e+00 : f32
    %76 = vector.broadcast %cst_21 : f32 to vector<16x256xf32>
    %77 = arith.addf %76, %75 : vector<16x256xf32>
    %78 = arith.divf %76, %77 : vector<16x256xf32>
    %79 = arith.mulf %73, %78 : vector<16x256xf32>
    %c19 = arith.constant 19 : index
    %c0_22 = arith.constant 0 : index
    %80 = vector.load %arg4[%c19, %c0_22] : memref<36x256xf32, #tpu.memory_space<vmem>>, vector<1x256xf32>
    %81 = vector.broadcast %80 : vector<1x256xf32> to vector<16x256xf32>
    %82 = arith.mulf %79, %81 : vector<16x256xf32>
    %c0_23 = arith.constant 0 : index
    %c5_24 = arith.constant 5 : index
    %83 = vector.load %arg5[%c0_23, %c5_24] : memref<16x11xf32, #tpu.memory_space<vmem>>, vector<16x1xf32>
    %84 = vector.broadcast %83 : vector<16x1xf32> to vector<16x256xf32>
    %85 = arith.mulf %82, %84 : vector<16x256xf32>
    %c5_i32 = arith.constant 5 : i32
    %86 = tpu.dynamic_rotate %79 by %c5_i32 dim 1 : vector<16x256xf32>, i32 -> vector<16x256xf32>
    %c14 = arith.constant 14 : index
    %c0_25 = arith.constant 0 : index
    %87 = vector.load %arg4[%c14, %c0_25] : memref<36x256xf32, #tpu.memory_space<vmem>>, vector<1x256xf32>
    %88 = vector.broadcast %87 : vector<1x256xf32> to vector<16x256xf32>
    %89 = arith.mulf %86, %88 : vector<16x256xf32>
    %c0_26 = arith.constant 0 : index
    %c0_27 = arith.constant 0 : index
    %90 = vector.load %arg5[%c0_26, %c0_27] : memref<16x11xf32, #tpu.memory_space<vmem>>, vector<16x1xf32>
    %91 = vector.broadcast %90 : vector<16x1xf32> to vector<16x256xf32>
    %92 = arith.mulf %89, %91 : vector<16x256xf32>
    %93 = arith.addf %85, %92 : vector<16x256xf32>
    %c4_i32 = arith.constant 4 : i32
    %94 = tpu.dynamic_rotate %79 by %c4_i32 dim 1 : vector<16x256xf32>, i32 -> vector<16x256xf32>
    %c15 = arith.constant 15 : index
    %c0_28 = arith.constant 0 : index
    %95 = vector.load %arg4[%c15, %c0_28] : memref<36x256xf32, #tpu.memory_space<vmem>>, vector<1x256xf32>
    %96 = vector.broadcast %95 : vector<1x256xf32> to vector<16x256xf32>
    %97 = arith.mulf %94, %96 : vector<16x256xf32>
    %c0_29 = arith.constant 0 : index
    %c1_30 = arith.constant 1 : index
    %98 = vector.load %arg5[%c0_29, %c1_30] : memref<16x11xf32, #tpu.memory_space<vmem>>, vector<16x1xf32>
    %99 = vector.broadcast %98 : vector<16x1xf32> to vector<16x256xf32>
    %100 = arith.mulf %97, %99 : vector<16x256xf32>
    %101 = arith.addf %93, %100 : vector<16x256xf32>
    %c3_i32_31 = arith.constant 3 : i32
    %102 = tpu.dynamic_rotate %79 by %c3_i32_31 dim 1 : vector<16x256xf32>, i32 -> vector<16x256xf32>
    %c16 = arith.constant 16 : index
    %c0_32 = arith.constant 0 : index
    %103 = vector.load %arg4[%c16, %c0_32] : memref<36x256xf32, #tpu.memory_space<vmem>>, vector<1x256xf32>
    %104 = vector.broadcast %103 : vector<1x256xf32> to vector<16x256xf32>
    %105 = arith.mulf %102, %104 : vector<16x256xf32>
    %c0_33 = arith.constant 0 : index
    %c2_34 = arith.constant 2 : index
    %106 = vector.load %arg5[%c0_33, %c2_34] : memref<16x11xf32, #tpu.memory_space<vmem>>, vector<16x1xf32>
    %107 = vector.broadcast %106 : vector<16x1xf32> to vector<16x256xf32>
    %108 = arith.mulf %105, %107 : vector<16x256xf32>
    %109 = arith.addf %101, %108 : vector<16x256xf32>
    %c2_i32_35 = arith.constant 2 : i32
    %110 = tpu.dynamic_rotate %79 by %c2_i32_35 dim 1 : vector<16x256xf32>, i32 -> vector<16x256xf32>
    %c17 = arith.constant 17 : index
    %c0_36 = arith.constant 0 : index
    %111 = vector.load %arg4[%c17, %c0_36] : memref<36x256xf32, #tpu.memory_space<vmem>>, vector<1x256xf32>
    %112 = vector.broadcast %111 : vector<1x256xf32> to vector<16x256xf32>
    %113 = arith.mulf %110, %112 : vector<16x256xf32>
    %c0_37 = arith.constant 0 : index
    %c3_38 = arith.constant 3 : index
    %114 = vector.load %arg5[%c0_37, %c3_38] : memref<16x11xf32, #tpu.memory_space<vmem>>, vector<16x1xf32>
    %115 = vector.broadcast %114 : vector<16x1xf32> to vector<16x256xf32>
    %116 = arith.mulf %113, %115 : vector<16x256xf32>
    %117 = arith.addf %109, %116 : vector<16x256xf32>
    %c1_i32_39 = arith.constant 1 : i32
    %118 = tpu.dynamic_rotate %79 by %c1_i32_39 dim 1 : vector<16x256xf32>, i32 -> vector<16x256xf32>
    %c18 = arith.constant 18 : index
    %c0_40 = arith.constant 0 : index
    %119 = vector.load %arg4[%c18, %c0_40] : memref<36x256xf32, #tpu.memory_space<vmem>>, vector<1x256xf32>
    %120 = vector.broadcast %119 : vector<1x256xf32> to vector<16x256xf32>
    %121 = arith.mulf %118, %120 : vector<16x256xf32>
    %c0_41 = arith.constant 0 : index
    %c4_42 = arith.constant 4 : index
    %122 = vector.load %arg5[%c0_41, %c4_42] : memref<16x11xf32, #tpu.memory_space<vmem>>, vector<16x1xf32>
    %123 = vector.broadcast %122 : vector<16x1xf32> to vector<16x256xf32>
    %124 = arith.mulf %121, %123 : vector<16x256xf32>
    %125 = arith.addf %117, %124 : vector<16x256xf32>
    %c255_i32_43 = arith.constant 255 : i32
    %126 = tpu.dynamic_rotate %79 by %c255_i32_43 dim 1 : vector<16x256xf32>, i32 -> vector<16x256xf32>
    %c20 = arith.constant 20 : index
    %c0_44 = arith.constant 0 : index
    %127 = vector.load %arg4[%c20, %c0_44] : memref<36x256xf32, #tpu.memory_space<vmem>>, vector<1x256xf32>
    %128 = vector.broadcast %127 : vector<1x256xf32> to vector<16x256xf32>
    %129 = arith.mulf %126, %128 : vector<16x256xf32>
    %c0_45 = arith.constant 0 : index
    %c6_46 = arith.constant 6 : index
    %130 = vector.load %arg5[%c0_45, %c6_46] : memref<16x11xf32, #tpu.memory_space<vmem>>, vector<16x1xf32>
    %131 = vector.broadcast %130 : vector<16x1xf32> to vector<16x256xf32>
    %132 = arith.mulf %129, %131 : vector<16x256xf32>
    %133 = arith.addf %125, %132 : vector<16x256xf32>
    %c254_i32_47 = arith.constant 254 : i32
    %134 = tpu.dynamic_rotate %79 by %c254_i32_47 dim 1 : vector<16x256xf32>, i32 -> vector<16x256xf32>
    %c21 = arith.constant 21 : index
    %c0_48 = arith.constant 0 : index
    %135 = vector.load %arg4[%c21, %c0_48] : memref<36x256xf32, #tpu.memory_space<vmem>>, vector<1x256xf32>
    %136 = vector.broadcast %135 : vector<1x256xf32> to vector<16x256xf32>
    %137 = arith.mulf %134, %136 : vector<16x256xf32>
    %c0_49 = arith.constant 0 : index
    %c7_50 = arith.constant 7 : index
    %138 = vector.load %arg5[%c0_49, %c7_50] : memref<16x11xf32, #tpu.memory_space<vmem>>, vector<16x1xf32>
    %139 = vector.broadcast %138 : vector<16x1xf32> to vector<16x256xf32>
    %140 = arith.mulf %137, %139 : vector<16x256xf32>
    %141 = arith.addf %133, %140 : vector<16x256xf32>
    %c253_i32_51 = arith.constant 253 : i32
    %142 = tpu.dynamic_rotate %79 by %c253_i32_51 dim 1 : vector<16x256xf32>, i32 -> vector<16x256xf32>
    %c22 = arith.constant 22 : index
    %c0_52 = arith.constant 0 : index
    %143 = vector.load %arg4[%c22, %c0_52] : memref<36x256xf32, #tpu.memory_space<vmem>>, vector<1x256xf32>
    %144 = vector.broadcast %143 : vector<1x256xf32> to vector<16x256xf32>
    %145 = arith.mulf %142, %144 : vector<16x256xf32>
    %c0_53 = arith.constant 0 : index
    %c8_54 = arith.constant 8 : index
    %146 = vector.load %arg5[%c0_53, %c8_54] : memref<16x11xf32, #tpu.memory_space<vmem>>, vector<16x1xf32>
    %147 = vector.broadcast %146 : vector<16x1xf32> to vector<16x256xf32>
    %148 = arith.mulf %145, %147 : vector<16x256xf32>
    %149 = arith.addf %141, %148 : vector<16x256xf32>
    %c252_i32 = arith.constant 252 : i32
    %150 = tpu.dynamic_rotate %79 by %c252_i32 dim 1 : vector<16x256xf32>, i32 -> vector<16x256xf32>
    %c23 = arith.constant 23 : index
    %c0_55 = arith.constant 0 : index
    %151 = vector.load %arg4[%c23, %c0_55] : memref<36x256xf32, #tpu.memory_space<vmem>>, vector<1x256xf32>
    %152 = vector.broadcast %151 : vector<1x256xf32> to vector<16x256xf32>
    %153 = arith.mulf %150, %152 : vector<16x256xf32>
    %c0_56 = arith.constant 0 : index
    %c9_57 = arith.constant 9 : index
    %154 = vector.load %arg5[%c0_56, %c9_57] : memref<16x11xf32, #tpu.memory_space<vmem>>, vector<16x1xf32>
    %155 = vector.broadcast %154 : vector<16x1xf32> to vector<16x256xf32>
    %156 = arith.mulf %153, %155 : vector<16x256xf32>
    %157 = arith.addf %149, %156 : vector<16x256xf32>
    %c251_i32 = arith.constant 251 : i32
    %158 = tpu.dynamic_rotate %79 by %c251_i32 dim 1 : vector<16x256xf32>, i32 -> vector<16x256xf32>
    %c24 = arith.constant 24 : index
    %c0_58 = arith.constant 0 : index
    %159 = vector.load %arg4[%c24, %c0_58] : memref<36x256xf32, #tpu.memory_space<vmem>>, vector<1x256xf32>
    %160 = vector.broadcast %159 : vector<1x256xf32> to vector<16x256xf32>
    %161 = arith.mulf %158, %160 : vector<16x256xf32>
    %c0_59 = arith.constant 0 : index
    %c10_60 = arith.constant 10 : index
    %162 = vector.load %arg5[%c0_59, %c10_60] : memref<16x11xf32, #tpu.memory_space<vmem>>, vector<16x1xf32>
    %163 = vector.broadcast %162 : vector<16x1xf32> to vector<16x256xf32>
    %164 = arith.mulf %161, %163 : vector<16x256xf32>
    %165 = arith.addf %157, %164 : vector<16x256xf32>
    %c0_61 = arith.constant 0 : index
    %c1_62 = arith.constant 1 : index
    %166 = vector.load %arg7[%c0_61, %c1_62] : memref<16x4xf32, #tpu.memory_space<vmem>>, vector<16x1xf32>
    %167 = vector.broadcast %166 : vector<16x1xf32> to vector<16x256xf32>
    %168 = arith.addf %165, %167 : vector<16x256xf32>
    %c30 = arith.constant 30 : index
    %c0_63 = arith.constant 0 : index
    %169 = vector.load %arg4[%c30, %c0_63] : memref<36x256xf32, #tpu.memory_space<vmem>>, vector<1x256xf32>
    %170 = vector.broadcast %169 : vector<1x256xf32> to vector<16x256xf32>
    %171 = arith.mulf %168, %170 : vector<16x256xf32>
    %c0_64 = arith.constant 0 : index
    %c5_65 = arith.constant 5 : index
    %172 = vector.load %arg6[%c0_64, %c5_65] : memref<16x11xf32, #tpu.memory_space<vmem>>, vector<16x1xf32>
    %173 = vector.broadcast %172 : vector<16x1xf32> to vector<16x256xf32>
    %174 = arith.mulf %171, %173 : vector<16x256xf32>
    %c80_i32 = arith.constant 80 : i32
    %175 = tpu.dynamic_rotate %168 by %c80_i32 dim 1 : vector<16x256xf32>, i32 -> vector<16x256xf32>
    %c25 = arith.constant 25 : index
    %c0_66 = arith.constant 0 : index
    %176 = vector.load %arg4[%c25, %c0_66] : memref<36x256xf32, #tpu.memory_space<vmem>>, vector<1x256xf32>
    %177 = vector.broadcast %176 : vector<1x256xf32> to vector<16x256xf32>
    %178 = arith.mulf %175, %177 : vector<16x256xf32>
    %c0_67 = arith.constant 0 : index
    %c0_68 = arith.constant 0 : index
    %179 = vector.load %arg6[%c0_67, %c0_68] : memref<16x11xf32, #tpu.memory_space<vmem>>, vector<16x1xf32>
    %180 = vector.broadcast %179 : vector<16x1xf32> to vector<16x256xf32>
    %181 = arith.mulf %178, %180 : vector<16x256xf32>
    %182 = arith.addf %174, %181 : vector<16x256xf32>
    %c64_i32 = arith.constant 64 : i32
    %183 = tpu.dynamic_rotate %168 by %c64_i32 dim 1 : vector<16x256xf32>, i32 -> vector<16x256xf32>
    %c26 = arith.constant 26 : index
    %c0_69 = arith.constant 0 : index
    %184 = vector.load %arg4[%c26, %c0_69] : memref<36x256xf32, #tpu.memory_space<vmem>>, vector<1x256xf32>
    %185 = vector.broadcast %184 : vector<1x256xf32> to vector<16x256xf32>
    %186 = arith.mulf %183, %185 : vector<16x256xf32>
    %c0_70 = arith.constant 0 : index
    %c1_71 = arith.constant 1 : index
    %187 = vector.load %arg6[%c0_70, %c1_71] : memref<16x11xf32, #tpu.memory_space<vmem>>, vector<16x1xf32>
    %188 = vector.broadcast %187 : vector<16x1xf32> to vector<16x256xf32>
    %189 = arith.mulf %186, %188 : vector<16x256xf32>
    %190 = arith.addf %182, %189 : vector<16x256xf32>
    %c48_i32_72 = arith.constant 48 : i32
    %191 = tpu.dynamic_rotate %168 by %c48_i32_72 dim 1 : vector<16x256xf32>, i32 -> vector<16x256xf32>
    %c27 = arith.constant 27 : index
    %c0_73 = arith.constant 0 : index
    %192 = vector.load %arg4[%c27, %c0_73] : memref<36x256xf32, #tpu.memory_space<vmem>>, vector<1x256xf32>
    %193 = vector.broadcast %192 : vector<1x256xf32> to vector<16x256xf32>
    %194 = arith.mulf %191, %193 : vector<16x256xf32>
    %c0_74 = arith.constant 0 : index
    %c2_75 = arith.constant 2 : index
    %195 = vector.load %arg6[%c0_74, %c2_75] : memref<16x11xf32, #tpu.memory_space<vmem>>, vector<16x1xf32>
    %196 = vector.broadcast %195 : vector<16x1xf32> to vector<16x256xf32>
    %197 = arith.mulf %194, %196 : vector<16x256xf32>
    %198 = arith.addf %190, %197 : vector<16x256xf32>
    %c32_i32_76 = arith.constant 32 : i32
    %199 = tpu.dynamic_rotate %168 by %c32_i32_76 dim 1 : vector<16x256xf32>, i32 -> vector<16x256xf32>
    %c28 = arith.constant 28 : index
    %c0_77 = arith.constant 0 : index
    %200 = vector.load %arg4[%c28, %c0_77] : memref<36x256xf32, #tpu.memory_space<vmem>>, vector<1x256xf32>
    %201 = vector.broadcast %200 : vector<1x256xf32> to vector<16x256xf32>
    %202 = arith.mulf %199, %201 : vector<16x256xf32>
    %c0_78 = arith.constant 0 : index
    %c3_79 = arith.constant 3 : index
    %203 = vector.load %arg6[%c0_78, %c3_79] : memref<16x11xf32, #tpu.memory_space<vmem>>, vector<16x1xf32>
    %204 = vector.broadcast %203 : vector<16x1xf32> to vector<16x256xf32>
    %205 = arith.mulf %202, %204 : vector<16x256xf32>
    %206 = arith.addf %198, %205 : vector<16x256xf32>
    %c16_i32_80 = arith.constant 16 : i32
    %207 = tpu.dynamic_rotate %168 by %c16_i32_80 dim 1 : vector<16x256xf32>, i32 -> vector<16x256xf32>
    %c29 = arith.constant 29 : index
    %c0_81 = arith.constant 0 : index
    %208 = vector.load %arg4[%c29, %c0_81] : memref<36x256xf32, #tpu.memory_space<vmem>>, vector<1x256xf32>
    %209 = vector.broadcast %208 : vector<1x256xf32> to vector<16x256xf32>
    %210 = arith.mulf %207, %209 : vector<16x256xf32>
    %c0_82 = arith.constant 0 : index
    %c4_83 = arith.constant 4 : index
    %211 = vector.load %arg6[%c0_82, %c4_83] : memref<16x11xf32, #tpu.memory_space<vmem>>, vector<16x1xf32>
    %212 = vector.broadcast %211 : vector<16x1xf32> to vector<16x256xf32>
    %213 = arith.mulf %210, %212 : vector<16x256xf32>
    %214 = arith.addf %206, %213 : vector<16x256xf32>
    %c240_i32_84 = arith.constant 240 : i32
    %215 = tpu.dynamic_rotate %168 by %c240_i32_84 dim 1 : vector<16x256xf32>, i32 -> vector<16x256xf32>
    %c31 = arith.constant 31 : index
    %c0_85 = arith.constant 0 : index
    %216 = vector.load %arg4[%c31, %c0_85] : memref<36x256xf32, #tpu.memory_space<vmem>>, vector<1x256xf32>
    %217 = vector.broadcast %216 : vector<1x256xf32> to vector<16x256xf32>
    %218 = arith.mulf %215, %217 : vector<16x256xf32>
    %c0_86 = arith.constant 0 : index
    %c6_87 = arith.constant 6 : index
    %219 = vector.load %arg6[%c0_86, %c6_87] : memref<16x11xf32, #tpu.memory_space<vmem>>, vector<16x1xf32>
    %220 = vector.broadcast %219 : vector<16x1xf32> to vector<16x256xf32>
    %221 = arith.mulf %218, %220 : vector<16x256xf32>
    %222 = arith.addf %214, %221 : vector<16x256xf32>
    %c224_i32_88 = arith.constant 224 : i32
    %223 = tpu.dynamic_rotate %168 by %c224_i32_88 dim 1 : vector<16x256xf32>, i32 -> vector<16x256xf32>
    %c32 = arith.constant 32 : index
    %c0_89 = arith.constant 0 : index
    %224 = vector.load %arg4[%c32, %c0_89] : memref<36x256xf32, #tpu.memory_space<vmem>>, vector<1x256xf32>
    %225 = vector.broadcast %224 : vector<1x256xf32> to vector<16x256xf32>
    %226 = arith.mulf %223, %225 : vector<16x256xf32>
    %c0_90 = arith.constant 0 : index
    %c7_91 = arith.constant 7 : index
    %227 = vector.load %arg6[%c0_90, %c7_91] : memref<16x11xf32, #tpu.memory_space<vmem>>, vector<16x1xf32>
    %228 = vector.broadcast %227 : vector<16x1xf32> to vector<16x256xf32>
    %229 = arith.mulf %226, %228 : vector<16x256xf32>
    %230 = arith.addf %222, %229 : vector<16x256xf32>
    %c208_i32_92 = arith.constant 208 : i32
    %231 = tpu.dynamic_rotate %168 by %c208_i32_92 dim 1 : vector<16x256xf32>, i32 -> vector<16x256xf32>
    %c33 = arith.constant 33 : index
    %c0_93 = arith.constant 0 : index
    %232 = vector.load %arg4[%c33, %c0_93] : memref<36x256xf32, #tpu.memory_space<vmem>>, vector<1x256xf32>
    %233 = vector.broadcast %232 : vector<1x256xf32> to vector<16x256xf32>
    %234 = arith.mulf %231, %233 : vector<16x256xf32>
    %c0_94 = arith.constant 0 : index
    %c8_95 = arith.constant 8 : index
    %235 = vector.load %arg6[%c0_94, %c8_95] : memref<16x11xf32, #tpu.memory_space<vmem>>, vector<16x1xf32>
    %236 = vector.broadcast %235 : vector<16x1xf32> to vector<16x256xf32>
    %237 = arith.mulf %234, %236 : vector<16x256xf32>
    %238 = arith.addf %230, %237 : vector<16x256xf32>
    %c192_i32 = arith.constant 192 : i32
    %239 = tpu.dynamic_rotate %168 by %c192_i32 dim 1 : vector<16x256xf32>, i32 -> vector<16x256xf32>
    %c34 = arith.constant 34 : index
    %c0_96 = arith.constant 0 : index
    %240 = vector.load %arg4[%c34, %c0_96] : memref<36x256xf32, #tpu.memory_space<vmem>>, vector<1x256xf32>
    %241 = vector.broadcast %240 : vector<1x256xf32> to vector<16x256xf32>
    %242 = arith.mulf %239, %241 : vector<16x256xf32>
    %c0_97 = arith.constant 0 : index
    %c9_98 = arith.constant 9 : index
    %243 = vector.load %arg6[%c0_97, %c9_98] : memref<16x11xf32, #tpu.memory_space<vmem>>, vector<16x1xf32>
    %244 = vector.broadcast %243 : vector<16x1xf32> to vector<16x256xf32>
    %245 = arith.mulf %242, %244 : vector<16x256xf32>
    %246 = arith.addf %238, %245 : vector<16x256xf32>
    %c176_i32 = arith.constant 176 : i32
    %247 = tpu.dynamic_rotate %168 by %c176_i32 dim 1 : vector<16x256xf32>, i32 -> vector<16x256xf32>
    %c35 = arith.constant 35 : index
    %c0_99 = arith.constant 0 : index
    %248 = vector.load %arg4[%c35, %c0_99] : memref<36x256xf32, #tpu.memory_space<vmem>>, vector<1x256xf32>
    %249 = vector.broadcast %248 : vector<1x256xf32> to vector<16x256xf32>
    %250 = arith.mulf %247, %249 : vector<16x256xf32>
    %c0_100 = arith.constant 0 : index
    %c10_101 = arith.constant 10 : index
    %251 = vector.load %arg6[%c0_100, %c10_101] : memref<16x11xf32, #tpu.memory_space<vmem>>, vector<16x1xf32>
    %252 = vector.broadcast %251 : vector<16x1xf32> to vector<16x256xf32>
    %253 = arith.mulf %250, %252 : vector<16x256xf32>
    %254 = arith.addf %246, %253 : vector<16x256xf32>
    %c0_102 = arith.constant 0 : index
    %c2_103 = arith.constant 2 : index
    %255 = vector.load %arg7[%c0_102, %c2_103] : memref<16x4xf32, #tpu.memory_space<vmem>>, vector<16x1xf32>
    %256 = vector.broadcast %255 : vector<16x1xf32> to vector<16x256xf32>
    %257 = arith.addf %254, %256 : vector<16x256xf32>
    %c0_104 = arith.constant 0 : index
    %c0_105 = arith.constant 0 : index
    %258 = vector.load %arg3[%c0_104, %c0_105] : memref<16x16xbf16, #tpu.memory_space<vmem>>, vector<16x16xbf16>
    %259 = arith.truncf %257 : vector<16x256xf32> to vector<16x256xbf16>
    %cst_106 = arith.constant dense<0.000000e+00> : vector<16x256xf32>
    %260 = tpu.matmul %258, %259, %cst_106 {dimension_numbers = #tpu.dot_dimension_numbers<[1], [0], [0], [1], [0, 0, 1, 1], [], []>} : vector<16x16xbf16>, vector<16x256xbf16>, vector<16x256xf32> -> vector<16x256xf32>
    %c0_107 = arith.constant 0 : index
    %c3_108 = arith.constant 3 : index
    %261 = vector.load %arg7[%c0_107, %c3_108] : memref<16x4xf32, #tpu.memory_space<vmem>>, vector<16x1xf32>
    %262 = vector.broadcast %261 : vector<16x1xf32> to vector<16x256xf32>
    %263 = arith.addf %260, %262 : vector<16x256xf32>
    %264 = arith.negf %263 : vector<16x256xf32>
    %265 = math.exp %264 : vector<16x256xf32>
    %cst_109 = arith.constant 1.000000e+00 : f32
    %266 = vector.broadcast %cst_109 : f32 to vector<16x256xf32>
    %267 = arith.addf %266, %265 : vector<16x256xf32>
    %268 = arith.divf %266, %267 : vector<16x256xf32>
    %269 = arith.mulf %263, %268 : vector<16x256xf32>
    %270 = arith.negf %269 : vector<16x256xf32>
    %271 = math.exp %270 : vector<16x256xf32>
    %cst_110 = arith.constant 1.000000e+00 : f32
    %272 = vector.broadcast %cst_110 : f32 to vector<16x256xf32>
    %273 = arith.addf %272, %271 : vector<16x256xf32>
    %274 = arith.divf %272, %273 : vector<16x256xf32>
    %c0_111 = arith.constant 0 : index
    %c0_112 = arith.constant 0 : index
    %c0_113 = arith.constant 0 : index
    %275 = vector.load %arg8[%c0_111, %c0_112, %c0_113] : memref<1x16x256xf32, #tpu.memory_space<vmem>>, vector<1x16x256xf32>
    %276 = vector.shape_cast %275 : vector<1x16x256xf32> to vector<16x256xf32>
    %277 = vector.shape_cast %274 : vector<16x256xf32> to vector<1x16x256xf32>
    tpu.vector_store %arg8[%c0_111, %c0_112, %c0_113], %277 {strides = array<i32>} : memref<1x16x256xf32, #tpu.memory_space<vmem>>, vector<1x16x256xf32>,
    return
  }
  func.func @transform_0(%arg0: i32) -> (i32, i32, i32) {
    %c0_i32 = arith.constant 0 : i32
    %c0_i32_0 = arith.constant 0 : i32
    %c0_i32_1 = arith.constant 0 : i32
    return %arg0, %c0_i32, %c0_i32_0 : i32, i32, i32
  }
  func.func @transform_1(%arg0: i32) -> (i32, i32) {
    %c0_i32 = arith.constant 0 : i32
    %c0_i32_0 = arith.constant 0 : i32
    %c0_i32_1 = arith.constant 0 : i32
    return %c0_i32, %c0_i32_0 : i32, i32
  }
  func.func @transform_2(%arg0: i32) -> (i32, i32) {
    %c0_i32 = arith.constant 0 : i32
    %c0_i32_0 = arith.constant 0 : i32
    %c0_i32_1 = arith.constant 0 : i32
    return %c0_i32, %c0_i32_0 : i32, i32
  }
  func.func @transform_3(%arg0: i32) -> (i32, i32) {
    %c0_i32 = arith.constant 0 : i32
    %c0_i32_0 = arith.constant 0 : i32
    %c0_i32_1 = arith.constant 0 : i32
    return %c0_i32, %c0_i32_0 : i32, i32
  }
  func.func @transform_4(%arg0: i32) -> (i32, i32) {
    %c0_i32 = arith.constant 0 : i32
    %c0_i32_0 = arith.constant 0 : i32
    %c0_i32_1 = arith.constant 0 : i32
    return %c0_i32, %c0_i32_0 : i32, i32
  }
  func.func @transform_5(%arg0: i32) -> (i32, i32) {
    %c0_i32 = arith.constant 0 : i32
    %c0_i32_0 = arith.constant 0 : i32
    %c0_i32_1 = arith.constant 0 : i32
    return %c0_i32, %c0_i32_0 : i32, i32
  }
  func.func @transform_6(%arg0: i32) -> (i32, i32) {
    %c0_i32 = arith.constant 0 : i32
    %c0_i32_0 = arith.constant 0 : i32
    %c0_i32_1 = arith.constant 0 : i32
    return %c0_i32, %c0_i32_0 : i32, i32
  }
  func.func @transform_7(%arg0: i32) -> (i32, i32, i32) {
    %c0_i32 = arith.constant 0 : i32
    %c0_i32_0 = arith.constant 0 : i32
    %c0_i32_1 = arith.constant 0 : i32
    return %arg0, %c0_i32, %c0_i32_0 : i32, i32, i32
  }
}

</mosaic_0001>

<bundles_post_ra>
// kernel: tpu_custom_call.1
= control target key start
LH: loop header
LB: loop body
LE: loop exit
PB: predicated region body
PF: predicated region fallthrough
CT: control target
= control target key end

     0   :  { %s4073_s0 = inlined_call_operand.hbm [shape: f32[2,16,256], index: 0, kind: input, shape index: {}]   ;;  %s4074_s1 = inlined_call_operand.hbm [shape: bf16[16,16], index: 1, kind: input, shape index: {}]   ;;  %s4075_s2 = inlined_call_operand.hbm [shape: bf16[16,16], index: 2, kind: input, shape index: {}]   ;;  %s4076_s3 = inlined_call_operand.hbm [shape: f32[36,256], index: 3, kind: input, shape index: {}]   ;;  %s4077_s4 = inlined_call_operand.vmem [shape: f32[16,11], index: 4, kind: input, shape index: {}]   ;;  %s4078_s5 = inlined_call_operand.hbm [shape: f32[16,11], index: 5, kind: input, shape index: {}]   ;;  %s4079_s6 = inlined_call_operand.vmem [shape: f32[16,4], index: 6, kind: input, shape index: {}]   ;;  %s4080_s7 = inlined_call_operand.hbm [shape: f32[2,16,256], index: 7, kind: output, shape index: {}]  }
   0x1   :  { %4118 = sst [smem:[#allocation27_spill]] %s4074_s1 }
   0x2   :  { %12 = vsyncpa [#allocation3], 0 }
   0x3   :  { %14 = vsyncpa [#allocation3 + $0x1], 0 }
   0x4   :  { %15 = vsyncpa [#allocation6], 0 }
   0x5   :  { %16 = vsyncpa [#allocation9], 0 }
   0x6   :  { %17 = vsyncpa [#allocation4], 0 }
   0x7   :  { %19 = vsyncpa [#allocation4 + $0x1], 0  ;;  %s2600_s24 = smov 0   ;;  %s2602_s25 = smov 0  }
   0x8   :  { %s2604_s26 = smov 0   ;;  %s2606_s27 = smov 0  }
   0x9 LB: > { %s2621_s28 = sadd.s32 4294967295, %s2519_s27   ;;  %s2024_s29 = sadd.s32 4294967294, %s2519_s27   ;;  %s2519_s27 = sphi %s2606_s27, %s4206_s27   ;;  %s2515_s26 = sphi %s2604_s26, %s4205_s26   ;;  %s2511_s25 = sphi %s2602_s25, %s4204_s25   ;;  %s2507_s24 = sphi %s2600_s24, %s4203_s24  }
   0xa   : > { %p45_p0 = scmp.ne.s32.totalorder %s2511_s25, %s2507_s24  ;;  %p46_p1 = scmp.eq.s32.totalorder %s2621_s28, 0 }
   0xb   : > { %p195_p2 = scmp.eq.s32.totalorder %s2621_s28, 1  ;;  %p201_p3 = scmp.eq.s32.totalorder %s2024_s29, 1 }
   0xc   : > { %p2630_p4 = por %p46_p1, %p45_p0  ;;  %p2025_p5 = scmp.ge.s32.totalorder %s2519_s27, 1 }
   0xd   : > { %p2635_p6 = por %p201_p3, %p45_p0  ;;  %p208_p7 = scmp.lt.s32.totalorder %s2519_s27, 3 }
   0xe   : > { %s4121_s1 = sld [smem:[#allocation27_spill]]  ;;  %s2521_s13 = smov [#allocation5]  }
   0xf   : > { %p2643_p8 = pnand %p2025_p5, %p208_p7  ;;  %s221_s14 = sshll.u32 %s2521_s13, 4  ;;  %s222_s14 = int_to_ptr.vmem [resolvable:$true] %s221_s14 }
  0x10   : > { %s247_s18 = sshll.u32 %s4076_s3, 4  ;;  %s2522_s19 = smov 64   ;;  %s248_s18 = int_to_ptr.hbm [resolvable:$true] %s247_s18 }
  0x11   : > { %p2094_p9 = pneg %p2643_p8  ;;  %s2523_s20 = smov 4  }
  0x12   : > { %s2524_s21 = smov [#allocation8]   ;;  %s4081_s23 = smov 256  }
  0x13   : > { %p2651_p10 = pnand %p2094_p9, %p46_p1  ;;  %s249_s22 = sshll.u32 %s2524_s21, 4  ;;  %s250_s22 = int_to_ptr.vmem [resolvable:$true] %s249_s22 }
  0x14   : > { %s219_s11 = sshll.u32 %s4121_s1, 4  ;;  %s4082_s29 = smov 16   ;;  %s220_s11 = int_to_ptr.hbm [resolvable:$true] %s219_s11 }
  0x15   : > { %2097 = dma.hbm_to_vmem [thread:$0]  (!%p2651_p10), %s220_s11, 128, %s222_s14, [#allocation6], %s2522_s19, %s2522_s19, %s2523_s20  }
  0x16   : > { %2103 = dma.hbm_to_vmem [thread:$0]  (!%p2651_p10), %s248_s18, 1280, %s250_s22, [#allocation9], %s4081_s23, %s4081_s23, %s4082_s29  }
  0x17   : > { %s233_s13 = sshll.u32 %s4075_s2, 4  ;;  %s2527_s11 = smov [#allocation7]   ;;  %s234_s13 = int_to_ptr.hbm [resolvable:$true] %s233_s13 }
  0x18   : > { %s235_s14 = sshll.u32 %s2527_s11, 4  ;;  %s264_s21 = sshll.u32 %s4078_s5, 4  ;;  %s236_s14 = int_to_ptr.vmem [resolvable:$true] %s235_s14  ;;  %s265_s21 = int_to_ptr.hbm [resolvable:$true] %s264_s21 }
  0x19   : > { %2100 = dma.hbm_to_vmem [thread:$0]  (!%p2651_p10), %s234_s13, 128, %s236_s14, [#allocation6], %s2522_s19, %s2522_s19, %s2523_s20  }
  0x1a   : > { %s2528_s18 = smov [#allocation10]   ;;  %s2529_s9 = smov 128  }
  0x1b   : > { %s266_s22 = sshll.u32 %s2528_s18, 4  ;;  %s2530_s10 = smov 8   ;;  %s267_s22 = int_to_ptr.vmem [resolvable:$true] %s266_s22 }
  0x1c   : > { %2106 = dma.hbm_to_vmem [thread:$0]  (!%p2651_p10), %s265_s21, 256, %s267_s22, [#allocation9], %s2529_s9, %s2529_s9, %s2530_s10  }
  0x1d   : > { %s2677_s11 = sadd.s32 1, %s2519_s27   ;;  %s32_s17 = sadd.s32 1, %s2515_s26 }
  0x1e   : > { %s29_s16 = ssub.s32 %s2519_s27, %s2677_s11  ;;  %p39_p13 = scmp.ne.s32.totalorder %s2515_s26, %s2511_s25 }
  0x1f   : > { %p30_p12 = scmp.eq.s32.totalorder %s29_s16, 0  ;;  %p40_p0 = scmp.eq.s32.totalorder %s2519_s27, 0 }
  0x20   : > { %p2690_p5 = por %p195_p2, %p39_p13  ;;  %p2119_p7 = scmp.lt.s32.totalorder %s2519_s27, 2 }
  0x21   : > { %s2686_s19 = scalar_select %p30_p12, %s2515_s26, %s32_s17  }
  0x22   : > { %p41_p3 = por %p40_p0, %p39_p13  ;;  %s283_s13 = sand.u32 1, %s2515_s26  }
  0x23   : > { %s2031_s15 = sshll.u32 %s283_s13, 5  ;;  %s2070_s14 = sshll.u32 %s2519_s27, 5 }
  0x24   : > { %s292_s22 = scalar_lea.hbm %s4073_s0, %s2070_s14  ;;  %s287_s9 = scalar_lea.vmem [#allocation2], %s2031_s15 }
  0x25   : > { %s295_s10 = sshll.u32 %s287_s9, 4  ;;  %s293_s16 = sshll.u32 %s292_s22, 4  ;;  %s296_s10 = int_to_ptr.vmem [resolvable:$true] %s295_s10  ;;  %s294_s16 = int_to_ptr.hbm [resolvable:$true] %s293_s16 }
  0x26   : > { %p2700_p9 = pnand %p2119_p7, %p41_p3  ;;  %s284_s23 = scalar_lea.sflag [#allocation3], %s283_s13 }
  0x27   : > { %s2415_s29 = sshra.s32 %s294_s16, 4  ;;  %s2422_s21 = scalar_lea.hbm %s4073_s0, 64  ;;  %s2416_s29 = int_to_ptr.hbm [resolvable:$true] %s2415_s29 }
  0x28   : > { %s2417_s1 = scalar_lea.hbm %s2416_s29, 32  ;;  %p2419_p10 = pneg %p2700_p9 }
  0x29   : > { %p2418_p2 = scmp.ne.s32.totalorder %s2416_s29, %s2417_s1  ;;  %p2423_p0 = scmp.lt.s32.totalorder %s2416_s29, %s4073_s0 }
  0x2a   : > { %p2424_p3 = scmp.lt.s32.totalorder %s2422_s21, %s2417_s1 }
  0x2b   : > { %p2420_p12 = pnand %p2419_p10, %p2418_p2 }
  0x2c   : > { %p2425_p7 = por %p2424_p3, %p2423_p0 }
  0x2d   : > { %p2421_p13 = pneg %p2420_p12 }
  0x2f   : > { %p2426_p11 = pnand %p2425_p7, %p2421_p13 }
  0x31   : > { %2429 = shalt.err (!%p2426_p11)
}
  0x32   : > { %s4126_s13 = smov 16   ;;  %s4127_s9 = smov 256  }
  0x33   : > { %2110 = dma.hbm_to_vmem [thread:$0]  (!%p2700_p9), %s294_s16, 512, %s296_s10, %s284_s23, %s4127_s9, %s4127_s9, %s4126_s13  }
  0x34   : > { %307 = sbr.rel (%p2643_p8) target bundleno = 1202 (0x4b2), region = 48 }
  0x39   : > { %s2720_s14 = sand.u32 1, %s2511_s25  }
  0x3a   : > { %s4083_s1 = sshll.u32 %s2720_s14, 5  ;;  %s310_s29 = scalar_lea.sflag [#allocation3], %s2720_s14 }
  0x3b   : > { %s313_s15 = scalar_lea.vmem [#allocation2], %s4083_s1 }
  0x3c   : > { %2490 = dma.done.wait (%p2630_p4), %s310_s29, 512  }
  0x3d   : > { %2492 = vsyncadd (%p2630_p4), %s310_s29, 4294966784 }
  0x3e   : > { %2494 = dma.done.wait (%p46_p1), [#allocation6], 256  }
  0x3f   : > { %2496 = vsyncadd (%p46_p1), [#allocation6], 4294967040 }
  0x40   : > { %2498 = dma.done.wait (%p46_p1), [#allocation9], 1536  }
  0x41   : > { %2500 = vsyncadd (%p46_p1), [#allocation9], 4294965760  ;;  %v2738_v0 = vld [vmem:[%s313_s15 + $0x8] sm:$0xff]  ;;  %v2740_v1 = vld [vmem:[%s313_s15] sm:$0xff]  ;;  %s2531_s12 = smov 48   ;;  %s2532_s30 = smov 32   ;;  %v389_v22 = vlaneseq }
  0x42   : > { %385 = vrot.lane.b32.xlu1 %v2738_v0, %s2531_s12  ;;  %381 = vrot.lane.b32.xlu0 %v2740_v1, %s2531_s12  ;;  %v2748_v2 = vld [vmem:[%s313_s15 + $0x18] sm:$0xff]  ;;  %v2750_v3 = vld [vmem:[%s313_s15 + $0x10] sm:$0xff]  ;;  %s2533_s23 = smov 16   ;;  %s4091_s10 = smov 112   ;;  %v2537_v11 = vmov 0   ;;  %v2538_v18 = vmov 5  }
  0x43   : > { %410 = vrot.lane.b32.xlu2 %v2740_v1, %s2532_s30  ;;  %s4089_s16 = smov 96   ;;  %s2536_s17 = smov 80   ;;  %2196 = vset.pattern.permute.xlu1 %v2537_v11  ;;  %v2808_v12 = vld [vmem:[%s4079_s6 + $0x8] sm:$0xff]  ;;  %v2823_v17 = vld [vmem:[%s4077_s4] sm:$0xff]  ;;  %v2833_v23 = vand.u32 127, %v389_v22  ;;  %vm4084_vm12 = vcmask 130048  }
  0x44   : > { %v2818_v16 = vld [vmem:[%s4077_s4 + $0x8] sm:$0xff]  ;;  %2197 = vset.pattern.permute.xlu2 %v2538_v18  ;;  %v2838_v26 = vld [vmem:[#allocation8 + $0x3] ss:$8 sm:$0x3]  ;;  %s2539_s15 = smov 3   ;;  %s2540_s21 = smov 2  }
  0x45   : > { %v2840_v27 = vld [vmem:[#allocation8] ss:$8 sm:$0x3]  ;;  %vm391_vm0 = vcmp.lt.s32.totalorder %v2833_v23, 48  ;;  %v373_v29 = vperm.slane %v2838_v26, 0  ;;  %v374_v30 = vperm.slane %v2838_v26, 1 }
  0x46   : > { %v398_v31 = vperm.slane %v2840_v27, 0  ;;  %v399_v32 = vperm.slane %v2840_v27, 1  ;;  %v2853_v35 = vld [vmem:[#allocation8 + $0x1] ss:$8 sm:$0x3]  ;;  %vm4088_vm1 = vcmp.lt.s32.totalorder %v2833_v23, 32 }
  0x47   : > { %v2860_v37 = vld [vmem:[#allocation8 + $0x2] ss:$8 sm:$0x3]  ;;  %v378_v40 = vmul.f32 %v374_v30, %v2738_v0  ;;  %v377_v41 = vmul.f32 %v373_v29, %v2740_v1  ;;  %v2870_v44 = vld [vmem:[#allocation8 + $0x4] ss:$8 sm:$0x3]  ;;  %v379_v45 = vmul.f32 %v373_v29, %v2750_v3 }
  0x48   : > { %v426_v46 = vperm.slane %v2853_v35, 0  ;;  %v427_v47 = vperm.slane %v2853_v35, 1  ;;  %vm4087_vm2 = vcmp.lt.s32.totalorder %v2833_v23, 16  ;;  %v454_v50 = vperm.slane %v2860_v37, 0  ;;  %s2541_s18 = smov 1   ;;  %s2543_s22 = smov 127  }
  0x49   : > { %v455_v51 = vperm.slane %v2860_v37, 1  ;;  %vm4086_vm3 = vcmp.lt.s32.totalorder %v2833_v23, 112  ;;  %v482_v53 = vperm.slane %v2870_v44, 0  ;;  %v483_v54 = vperm.slane %v2870_v44, 1  ;;  %s2544_s13 = smov 126   ;;  %s2545_s9 = smov 125  }
  0x4a   : > { %387 = vrot.lane.b32.xlu1 %v2748_v2, %s2531_s12  ;;  %383 = vrot.lane.b32.xlu0 %v2750_v3, %s2531_s12  ;;  %v2895_v60 = vld [vmem:[#allocation8 + $0x5] ss:$8 sm:$0x3]  ;;  %vm4085_vm4 = vcmp.lt.s32.totalorder %v2833_v23, 96  ;;  %vm530_vm5 = vcmp.lt.s32.totalorder %v2833_v23, 80  ;;  %vm569_vm6 = vcmp.lt.s32.totalorder %v2833_v23, 3 }
  0x4b   : > { %412 = vrot.lane.b32.xlu2 %v2750_v3, %s2532_s30  ;;  %vm597_vm7 = vcmp.lt.s32.totalorder %v2833_v23, 2  ;;  %vm625_vm8 = vcmp.lt.s32.totalorder %v2833_v23, 1  ;;  %vm653_vm9 = vcmp.lt.s32.totalorder %v2833_v23, 127  ;;  %vm681_vm10 = vcmp.lt.s32.totalorder %v2833_v23, 126  ;;  %s2554_s1 = smov 5   ;;  %s2555_s29 = smov 4  }
  0x4c   : > { %vm709_vm11 = vcmp.lt.s32.totalorder %v2833_v23, 125 }
  0x52   : > { %416 = vrot.lane.b32.xlu1 %v2748_v2, %s2532_s30  ;;  %414 = vrot.lane.b32.xlu0 %v2738_v0, %s2532_s30 }
  0x53   : > { %438 = vrot.lane.b32.xlu2 %v2740_v1, %s2533_s23 }
  0x5a   : > { %442 = vrot.lane.b32.xlu1 %v2738_v0, %s2533_s23  ;;  %440 = vrot.lane.b32.xlu0 %v2750_v3, %s2533_s23 }
  0x5b   : > { %444 = vrot.lane.b32.xlu2 %v2748_v2, %s2533_s23 }
  0x62   : > { %468 = vrot.lane.b32.xlu1 %v2750_v3, %s4091_s10  ;;  %466 = vrot.lane.b32.xlu0 %v2740_v1, %s4091_s10 }
  0x63   : > { %470 = vrot.lane.b32.xlu2 %v2738_v0, %s4091_s10 }
  0x6a   : > { %494 = vrot.lane.b32.xlu1 %v2740_v1, %s4089_s16  ;;  %472 = vrot.lane.b32.xlu0 %v2748_v2, %s4091_s10  ;;  %s2557_s10 = smov 123  }
  0x6b   : > { %496 = vrot.lane.b32.xlu2 %v2750_v3, %s4089_s16 }
  0x72   : > { %500 = vrot.lane.b32.xlu1 %v2748_v2, %s4089_s16  ;;  %498 = vrot.lane.b32.xlu0 %v2738_v0, %s4089_s16  ;;  %s2556_s16 = smov 124  }
  0x73   : > { %522 = vrot.lane.b32.xlu2 %v2740_v1, %s2536_s17 }
  0x7a   : > { %526 = vrot.lane.b32.xlu1 %v2738_v0, %s2536_s17  ;;  %524 = vrot.lane.b32.xlu0 %v2750_v3, %s2536_s17 }
  0x7b   : > { %528 = vrot.lane.b32.xlu2 %v2748_v2, %s2536_s17 }
  0x82   : > { %742 = vperm.xlu1 %2196, %v2808_v12  }
  0x83   : > { %877 = vperm.xlu2 %2197, %v2823_v17  }
  0x8a   : > { %2198 = vset.pattern.permute.xlu1 %v2538_v18 }
  0x8b   : > { %882 = vperm.xlu1 %2198, %v2818_v16  }
  0x93   : > { %2199 = vset.pattern.permute.xlu1 %v2537_v11 }
  0x9d   : > { %v2794_v4 = vpop.permute.xlu2 %410 }
  0xa5   : > { %v2796_v5 = vpop.permute.xlu2 %412 }
  0xad   : > { %v2798_v8 = vpop.permute.xlu2 %438 }
  0xb4   : > { %v386_v6 = vpop.permute.xlu1 %385  ;;  %v382_v7 = vpop.permute.xlu0 %381 }
  0xb5   : > { %v2810_v13 = vpop.permute.xlu2 %444  ;;  %v392_v33 = vsel %vm391_vm0, %v382_v7, %v386_v6  ;;  %v394_v34 = vsel %vm391_vm0, %v386_v6, %v382_v7 }
  0xb6   : > { %v402_v42 = vmul.f32 %v398_v31, %v394_v34  ;;  %v403_v43 = vmul.f32 %v399_v32, %v392_v33 }
  0xb8   : > { %v406_v56 = vadd.f32 %v402_v42, %v377_v41  ;;  %v407_v57 = vadd.f32 %v403_v43, %v378_v40  ;;  %v536_v40 = vld [vmem:[#allocation8 + $0x6] ss:$8 sm:$0x3] }
  0xbc   : > { %v2800_v9 = vpop.permute.xlu1 %387  ;;  %v2802_v10 = vpop.permute.xlu0 %383 }
  0xbd   : > { %v2827_v19 = vpop.permute.xlu2 %470  ;;  %v395_v36 = vsel %vm391_vm0, %v2800_v9, %v2802_v10  ;;  %v393_v61 = vsel %vm391_vm0, %v2802_v10, %v2800_v9  ;;  %v510_v10 = vperm.slane %v2895_v60, 0 }
  0xbe   : > { %v404_v48 = vmul.f32 %v398_v31, %v395_v36 }
  0xc0   : > { %v408_v0 = vadd.f32 %v404_v48, %v379_v45 }
  0xc4   : > { %v2813_v14 = vpop.permute.xlu1 %416  ;;  %v415_v15 = vpop.permute.xlu0 %414 }
  0xc5   : > { %v2842_v28 = vpop.permute.xlu2 %496  ;;  %v422_v49 = vsel %vm4088_vm1, %v2813_v14, %v2796_v5  ;;  %v421_v52 = vsel %vm4088_vm1, %v415_v15, %v2794_v4  ;;  %v419_v58 = vsel %vm4088_vm1, %v2794_v4, %v415_v15 }
  0xc6   : > { %v432_v62 = vmul.f32 %v426_v46, %v422_v49  ;;  %v430_v1 = vmul.f32 %v426_v46, %v421_v52  ;;  %v431_v6 = vmul.f32 %v427_v47, %v419_v58  ;;  %v538_v52 = vperm.slane %v536_v40, 0 }
  0xc8   : > { %v436_v33 = vadd.f32 %v432_v62, %v408_v0  ;;  %v435_v43 = vadd.f32 %v431_v6, %v407_v57 }
  0xcc   : > { %v443_v20 = vpop.permute.xlu1 %442  ;;  %v2831_v21 = vpop.permute.xlu0 %440 }
  0xcd   : > { %v523_v55 = vpop.permute.xlu2 %522  ;;  %v450_v59 = vsel %vm4087_vm2, %v2810_v13, %v2831_v21  ;;  %v449_v63 = vsel %vm4087_vm2, %v443_v20, %v2798_v8  ;;  %v447_v3 = vsel %vm4087_vm2, %v2798_v8, %v443_v20  ;;  %v511_v20 = vperm.slane %v2895_v60, 1 }
  0xce   : > { %v460_v7 = vmul.f32 %v454_v50, %v450_v59  ;;  %v458_v29 = vmul.f32 %v454_v50, %v449_v63  ;;  %v459_v34 = vmul.f32 %v455_v51, %v447_v3  ;;  %v448_v62 = vsel %vm4087_vm2, %v2831_v21, %v2810_v13 }
  0xd0   : > { %v464_v45 = vadd.f32 %v460_v7, %v436_v33  ;;  %v463_v58 = vadd.f32 %v459_v34, %v435_v43  ;;  %v2547_v43 = vmov 1  }
  0xd4   : > { %v2836_v24 = vpop.permute.xlu1 %468  ;;  %v467_v25 = vpop.permute.xlu0 %466 }
  0xd5   : > { %v475_v9 = vsel %vm4086_vm3, %v467_v25, %v2827_v19  ;;  %v477_v8 = vsel %vm4086_vm3, %v2827_v19, %v467_v25  ;;  %v420_v19 = vsel %vm4088_vm1, %v2796_v5, %v2813_v14  ;;  %v434_v25 = vadd.f32 %v430_v1, %v406_v56  ;;  %v529_v14 = vpop.permute.xlu2 %528 }
  0xd6   : > { %v486_v41 = vmul.f32 %v482_v53, %v475_v9  ;;  %v487_v46 = vmul.f32 %v483_v54, %v477_v8  ;;  %v539_v5 = vperm.slane %v536_v40, 1  ;;  %v433_v56 = vmul.f32 %v427_v47, %v420_v19 }
  0xd7   : > { %v462_v49 = vadd.f32 %v458_v29, %v434_v25  ;;  %v2546_v19 = vmov 8  }
  0xd8   : > { %v491_v63 = vadd.f32 %v487_v46, %v463_v58  ;;  %2212 = vset.pattern.permute.xlu0 %v2546_v19  ;;  %v3057_v58 = vld [vmem:[%s4079_s6] sm:$0xff] }
  0xd9   : > { %v490_v57 = vadd.f32 %v486_v41, %v462_v49 }
  0xdc   : > { %v495_v38 = vpop.permute.xlu1 %494  ;;  %v2862_v39 = vpop.permute.xlu0 %472 }
  0xdd   : > { %v476_v4 = vsel %vm4086_vm3, %v2836_v24, %v2862_v39  ;;  %v478_v0 = vsel %vm4086_vm3, %v2862_v39, %v2836_v24  ;;  %v461_v24 = vmul.f32 %v455_v51, %v448_v62  ;;  %v3023_v8 = vpop.permute.xlu2 %877 }
  0xde   : > { %v488_v35 = vmul.f32 %v482_v53, %v476_v4  ;;  %v405_v53 = vmul.f32 %v399_v32, %v393_v61 }
  0xe0   : > { %v492_v59 = vadd.f32 %v488_v35, %v464_v45 }
  0xe4   : > { %v501_v15 = vpop.permute.xlu1 %500  ;;  %v499_v22 = vpop.permute.xlu0 %498 }
  0xe5   : > { %v504_v31 = vsel %vm4085_vm4, %v2842_v28, %v501_v15  ;;  %v503_v36 = vsel %vm4085_vm4, %v495_v38, %v499_v22  ;;  %v505_v42 = vsel %vm4085_vm4, %v499_v22, %v495_v38  ;;  %v380_v38 = vmul.f32 %v374_v30, %v2748_v2 }
  0xe6   : > { %v516_v48 = vmul.f32 %v510_v10, %v504_v31  ;;  %v514_v50 = vmul.f32 %v510_v10, %v503_v36  ;;  %v515_v60 = vmul.f32 %v511_v20, %v505_v42  ;;  %v506_v39 = vsel %vm4085_vm4, %v501_v15, %v2842_v28 }
  0xe7   : > { %v409_v4 = vadd.f32 %v405_v53, %v380_v38  ;;  %v489_v10 = vmul.f32 %v483_v54, %v478_v0  ;;  %v517_v37 = vmul.f32 %v511_v20, %v506_v39  ;;  %v4095_v54 = vmov 2  }
  0xe8   : > { %v520_v1 = vadd.f32 %v516_v48, %v492_v59  ;;  %v518_v2 = vadd.f32 %v514_v50, %v490_v57  ;;  %v519_v13 = vadd.f32 %v515_v60, %v491_v63  ;;  %2202 = vset.pattern.permute.xlu2 %v4095_v54  ;;  %v551_v59 = vld [vmem:[#allocation8 + $0x12] ss:$8 sm:$0x3]  ;;  %v603_v57 = vld [vmem:[#allocation8 + $0x10] ss:$8 sm:$0x3] }
  0xe9   : > { %v437_v9 = vadd.f32 %v433_v56, %v409_v4  ;;  %v553_v38 = vperm.slane %v551_v59, 0 }
  0xeb   : > { %v465_v28 = vadd.f32 %v461_v24, %v437_v9  ;;  %v3090_v24 = vld [vmem:[#allocation8 + $0x13] ss:$8 sm:$0x3] }
  0xec   : > { %v527_v3 = vpop.permute.xlu1 %526  ;;  %v525_v26 = vpop.permute.xlu0 %524 }
  0xed   : > { %v531_v27 = vsel %vm530_vm5, %v523_v55, %v527_v3  ;;  %v533_v30 = vsel %vm530_vm5, %v527_v3, %v523_v55  ;;  %v532_v32 = vsel %vm530_vm5, %v525_v26, %v529_v14  ;;  %v534_v22 = vsel %vm530_vm5, %v529_v14, %v525_v26  ;;  %v3076_v26 = vld [vmem:[#allocation8 + $0x11] ss:$8 sm:$0x3] }
  0xee   : > { %v542_v21 = vmul.f32 %v538_v52, %v531_v27  ;;  %v543_v47 = vmul.f32 %v539_v5, %v533_v30  ;;  %v544_v61 = vmul.f32 %v538_v52, %v532_v32  ;;  %v493_v51 = vadd.f32 %v489_v10, %v465_v28 }
  0xef   : > { %v545_v15 = vmul.f32 %v539_v5, %v534_v22  ;;  %v554_v5 = vperm.slane %v551_v59, 1  ;;  %v634_v28 = vperm.slane %v3076_v26, 1 }
  0xf0   : > { %v2960_v6 = vadd.f32 %v542_v21, %v518_v2  ;;  %v2962_v7 = vadd.f32 %v543_v47, %v519_v13  ;;  %v2964_v55 = vadd.f32 %v544_v61, %v520_v1  ;;  %v521_v29 = vadd.f32 %v517_v37, %v493_v51 }
  0xf1   : > { %v4093_v2 = vmov 3   ;;  %v605_v13 = vperm.slane %v603_v57, 0 }
  0xf2   : > { %565 = vrot.lane.b32.xlu2 %v2962_v7, %s2539_s15  ;;  %563 = vrot.lane.b32.xlu1 %v2964_v55, %s2539_s15  ;;  %v2976_v44 = vadd.f32 %v545_v15, %v521_v29  ;;  %v558_v0 = vmul.f32 %v554_v5, %v2962_v7  ;;  %v557_v27 = vmul.f32 %v553_v38, %v2960_v6  ;;  %v661_v29 = vperm.slane %v3090_v24, 0 }
  0xf3   : > { %561 = vrot.lane.b32.xlu0 %v2960_v6, %s2539_s15  ;;  %v559_v30 = vmul.f32 %v553_v38, %v2964_v55 }
  0xf4   : > { %v3025_v31 = vpop.permute.xlu1 %742  ;;  %v560_v61 = vmul.f32 %v554_v5, %v2976_v44 }
  0xfa   : > { %591 = vrot.lane.b32.xlu2 %v2964_v55, %s2540_s21  ;;  %589 = vrot.lane.b32.xlu1 %v2960_v6, %s2540_s21 }
  0xfb   : > { %567 = vrot.lane.b32.xlu0 %v2976_v44, %s2539_s15 }
  0xfd   : > { %v3029_v34 = vpop.permute.xlu1 %882 }
 0x102   : > { %617 = vrot.lane.b32.xlu2 %v2960_v6, %s2541_s18  ;;  %595 = vrot.lane.b32.xlu1 %v2976_v44, %s2540_s21 }
 0x103   : > { %593 = vrot.lane.b32.xlu0 %v2962_v7, %s2540_s21 }
 0x10a   : > { %623 = vrot.lane.b32.xlu2 %v2976_v44, %s2541_s18  ;;  %621 = vrot.lane.b32.xlu1 %v2962_v7, %s2541_s18 }
 0x10b   : > { %619 = vrot.lane.b32.xlu0 %v2964_v55, %s2541_s18 }
 0x112   : > { %649 = vrot.lane.b32.xlu2 %v2962_v7, %s2543_s22  ;;  %647 = vrot.lane.b32.xlu1 %v2964_v55, %s2543_s22 }
 0x113   : > { %645 = vrot.lane.b32.xlu0 %v2960_v6, %s2543_s22 }
 0x11a   : > { %675 = vrot.lane.b32.xlu2 %v2964_v55, %s2544_s13  ;;  %673 = vrot.lane.b32.xlu1 %v2960_v6, %s2544_s13 }
 0x11b   : > { %651 = vrot.lane.b32.xlu0 %v2976_v44, %s2543_s22 }
 0x122   : > { %701 = vrot.lane.b32.xlu2 %v2960_v6, %s2545_s9  ;;  %679 = vrot.lane.b32.xlu1 %v2976_v44, %s2544_s13  ;;  %v606_v6 = vperm.slane %v603_v57, 1 }
 0x123   : > { %677 = vrot.lane.b32.xlu0 %v2962_v7, %s2544_s13 }
 0x12a   : > { %997 = vperm.xlu2 %2202, %v2818_v16   ;;  %705 = vrot.lane.b32.xlu1 %v2962_v7, %s2545_s9  ;;  %v633_v7 = vperm.slane %v3076_v26, 0 }
 0x12b   : > { %703 = vrot.lane.b32.xlu0 %v2964_v55, %s2545_s9 }
 0x132   : > { %707 = vrot.lane.b32.xlu2 %v2976_v44, %s2545_s9  ;;  %918 = vperm.xlu1 %2199, %v2818_v16   ;;  %v687_v44 = vld [vmem:[#allocation8 + $0x14] ss:$8 sm:$0x3] }
 0x133   : > { %1192 = vperm.xlu0 %2212, %v2818_v16   ;;  %2204 = vset.pattern.permute.xlu2 %v4093_v2  ;;  %v689_v5 = vperm.slane %v687_v44, 0  ;;  %v690_v57 = vperm.slane %v687_v44, 1 }
 0x13a   : > { %2200 = vset.pattern.permute.xlu1 %v2547_v43  ;;  %1036 = vperm.xlu2 %2204, %v2818_v16  }
 0x13b   : > { %2213 = vset.pattern.permute.xlu0 %v2547_v43  ;;  %958 = vperm.xlu1 %2200, %v2818_v16  }
 0x13c   : > { %954 = vperm.xlu0 %2213, %v2823_v17  }
 0x143   : > { %2201 = vset.pattern.permute.xlu1 %v4095_v54 }
 0x144   : > { %1288 = vperm.xlu0 %2213, %v2808_v12   ;;  %993 = vperm.xlu1 %2201, %v2823_v17   ;;  %v575_v12 = vld [vmem:[#allocation8 + $0x7] ss:$8 sm:$0x3] }
 0x145   : > { %v577_v53 = vperm.slane %v575_v12, 0  ;;  %v578_v56 = vperm.slane %v575_v12, 1  ;;  %v3112_v12 = vld [vmem:[#allocation10] sm:$0xff] }
 0x14c   : > { %v566_v20 = vpop.permute.xlu2 %565  ;;  %2218 = vset.pattern.permute.xlu0 %v2537_v11  ;;  %2203 = vset.pattern.permute.xlu1 %v4093_v2 }
 0x14d   : > { %737 = vperm.xlu0 %2218, %v3057_v58   ;;  %1032 = vperm.xlu1 %2203, %v2823_v17  }
 0x154   : > { %v3027_v33 = vpop.permute.xlu2 %591 }
 0x155   : > { %914 = vperm.xlu0 %2218, %v2823_v17  }
 0x15c   : > { %v3031_v35 = vpop.permute.xlu2 %617 }
 0x15d   : > { %1346 = vperm.xlu0 %2218, %v3112_v12  }
 0x164   : > { %v564_v36 = vpop.permute.xlu1 %563  ;;  %v3035_v25 = vpop.permute.xlu2 %623 }
 0x165   : > { %v562_v40 = vpop.permute.xlu0 %561 }
 0x166   : > { %v570_v62 = vsel %vm569_vm6, %v562_v40, %v566_v20  ;;  %v572_v63 = vsel %vm569_vm6, %v566_v20, %v562_v40 }
 0x167   : > { %v581_v21 = vmul.f32 %v577_v53, %v572_v63  ;;  %v582_v47 = vmul.f32 %v578_v56, %v570_v62  ;;  %v2549_v62 = vmov 4  }
 0x168   : > { %2205 = vset.pattern.permute.xlu1 %v2549_v62  ;;  %2206 = vset.pattern.permute.xlu2 %v2549_v62 }
 0x169   : > { %v585_v20 = vadd.f32 %v581_v21, %v557_v27  ;;  %1071 = vperm.xlu1 %2205, %v2823_v17   ;;  %1075 = vperm.xlu2 %2206, %v2818_v16  }
 0x16c   : > { %v3037_v41 = vpop.permute.xlu1 %589  ;;  %v3043_v46 = vpop.permute.xlu2 %649 }
 0x16d   : > { %v568_v42 = vpop.permute.xlu0 %567 }
 0x16e   : > { %v573_v1 = vsel %vm569_vm6, %v568_v42, %v564_v36  ;;  %v571_v32 = vsel %vm569_vm6, %v564_v36, %v568_v42  ;;  %v586_v36 = vadd.f32 %v582_v47, %v558_v0 }
 0x16f   : > { %v583_v39 = vmul.f32 %v577_v53, %v573_v1  ;;  %v584_v9 = vmul.f32 %v578_v56, %v571_v32 }
 0x171   : > { %v587_v40 = vadd.f32 %v583_v39, %v559_v30 }
 0x174   : > { %v596_v45 = vpop.permute.xlu1 %595  ;;  %v3052_v52 = vpop.permute.xlu2 %675 }
 0x175   : > { %v594_v48 = vpop.permute.xlu0 %593  ;;  %v601_v4 = vsel %vm597_vm7, %v596_v45, %v3027_v33  ;;  %v599_v10 = vsel %vm597_vm7, %v3027_v33, %v596_v45  ;;  %v662_v33 = vperm.slane %v3090_v24, 1  ;;  %v715_v24 = vld [vmem:[#allocation8 + $0x15] ss:$8 sm:$0x3] }
 0x176   : > { %v600_v22 = vsel %vm597_vm7, %v594_v48, %v3037_v41  ;;  %v611_v51 = vmul.f32 %v605_v13, %v601_v4  ;;  %v598_v15 = vsel %vm597_vm7, %v3037_v41, %v594_v48  ;;  %v612_v42 = vmul.f32 %v606_v6, %v599_v10 }
 0x177   : > { %v609_v45 = vmul.f32 %v605_v13, %v600_v22  ;;  %v588_v41 = vadd.f32 %v584_v9, %v560_v61  ;;  %v610_v48 = vmul.f32 %v606_v6, %v598_v15  ;;  %v718_v15 = vperm.slane %v715_v24, 1 }
 0x178   : > { %v615_v38 = vadd.f32 %v611_v51, %v587_v40  ;;  %v717_v51 = vperm.slane %v715_v24, 0 }
 0x179   : > { %v613_v26 = vadd.f32 %v609_v45, %v585_v20  ;;  %v614_v30 = vadd.f32 %v610_v48, %v586_v36 }
 0x17c   : > { %v3048_v49 = vpop.permute.xlu1 %621  ;;  %v3074_v3 = vpop.permute.xlu2 %701 }
 0x17d   : > { %v3050_v50 = vpop.permute.xlu0 %619  ;;  %v628_v59 = vsel %vm625_vm8, %v3048_v49, %v3031_v35  ;;  %v626_v53 = vsel %vm625_vm8, %v3031_v35, %v3048_v49  ;;  %v616_v49 = vadd.f32 %v612_v42, %v588_v41  ;;  %v2551_v42 = vmov 7  }
 0x17e   : > { %v629_v56 = vsel %vm625_vm8, %v3035_v25, %v3050_v50  ;;  %v637_v63 = vmul.f32 %v633_v7, %v628_v59  ;;  %v627_v0 = vsel %vm625_vm8, %v3050_v50, %v3035_v25  ;;  %v638_v32 = vmul.f32 %v634_v28, %v626_v53  ;;  %2232 = vset.pattern.permute.xlu0 %v2551_v42 }
 0x17f   : > { %v639_v13 = vmul.f32 %v633_v7, %v629_v56  ;;  %v640_v61 = vmul.f32 %v634_v28, %v627_v0  ;;  %1581 = vperm.xlu0 %2232, %v3112_v12  }
 0x180   : > { %v641_v39 = vadd.f32 %v637_v63, %v613_v26  ;;  %v642_v28 = vadd.f32 %v638_v32, %v614_v30 }
 0x181   : > { %v643_v44 = vadd.f32 %v639_v13, %v615_v38 }
 0x184   : > { %v3061_v60 = vpop.permute.xlu1 %647  ;;  %v3129_v1 = vpop.permute.xlu2 %997 }
 0x185   : > { %v3064_v14 = vpop.permute.xlu0 %645 }
 0x186   : > { %v654_v35 = vsel %vm653_vm9, %v3064_v14, %v3043_v46  ;;  %v656_v25 = vsel %vm653_vm9, %v3043_v46, %v3064_v14 }
 0x187   : > { %v665_v4 = vmul.f32 %v661_v29, %v654_v35  ;;  %v666_v6 = vmul.f32 %v662_v33, %v656_v25 }
 0x189   : > { %v669_v20 = vadd.f32 %v665_v4, %v641_v39  ;;  %v670_v36 = vadd.f32 %v666_v6, %v642_v28  ;;  %v4098_v4 = vmov 10  }
 0x18c   : > { %v674_v55 = vpop.permute.xlu1 %673  ;;  %v708_v48 = vpop.permute.xlu2 %707 }
 0x18d   : > { %v652_v37 = vpop.permute.xlu0 %651 }
 0x18e   : > { %v655_v50 = vsel %vm653_vm9, %v3061_v60, %v652_v37  ;;  %v657_v21 = vsel %vm653_vm9, %v652_v37, %v3061_v60 }
 0x18f   : > { %v667_v9 = vmul.f32 %v661_v29, %v655_v50  ;;  %v668_v10 = vmul.f32 %v662_v33, %v657_v21  ;;  %v2550_v33 = vmov 6  }
 0x190   : > { %2207 = vset.pattern.permute.xlu1 %v2550_v33  ;;  %2208 = vset.pattern.permute.xlu2 %v2550_v33 }
 0x191   : > { %v671_v45 = vadd.f32 %v667_v9, %v643_v44  ;;  %1110 = vperm.xlu1 %2207, %v2823_v17   ;;  %1114 = vperm.xlu2 %2208, %v2818_v16  }
 0x194   : > { %v680_v27 = vpop.permute.xlu1 %679 }
 0x195   : > { %v678_v47 = vpop.permute.xlu0 %677  ;;  %v683_v7 = vsel %vm681_vm10, %v3052_v52, %v680_v27  ;;  %v685_v60 = vsel %vm681_vm10, %v680_v27, %v3052_v52 }
 0x196   : > { %v682_v46 = vsel %vm681_vm10, %v674_v55, %v678_v47  ;;  %v684_v14 = vsel %vm681_vm10, %v678_v47, %v674_v55  ;;  %v644_v55 = vadd.f32 %v640_v61, %v616_v49  ;;  %v695_v40 = vmul.f32 %v689_v5, %v683_v7  ;;  %v2071_v47 = vld [vmem:[#allocation5] sm:$0xff] }
 0x197   : > { %v693_v22 = vmul.f32 %v689_v5, %v682_v46  ;;  %v694_v37 = vmul.f32 %v690_v57, %v684_v14  ;;  %v696_v29 = vmul.f32 %v690_v57, %v685_v60  ;;  %v4097_v61 = vmov 9   ;;  %v3195_v46 = vld [vmem:[#allocation10 + $0x8] sm:$0xff] }
 0x198   : > { %v672_v59 = vadd.f32 %v668_v10, %v644_v55  ;;  %v699_v25 = vadd.f32 %v695_v40, %v671_v45  ;;  %2233 = vset.pattern.permute.xlu0 %v4097_v61 }
 0x199   : > { %v697_v41 = vadd.f32 %v693_v22, %v669_v20  ;;  %v698_v56 = vadd.f32 %v694_v37, %v670_v36  ;;  %2209 = vset.pattern.permute.xlu1 %v2551_v42  ;;  %2210 = vset.pattern.permute.xlu2 %v2551_v42 }
 0x19a   : > { %v700_v50 = vadd.f32 %v696_v29, %v672_v59  ;;  %1149 = vperm.xlu1 %2209, %v2823_v17   ;;  %1153 = vperm.xlu2 %2210, %v2818_v16  }
 0x19b   : > { %1228 = vperm.xlu0 %2233, %v2823_v17  }
 0x19c   : > { %v706_v52 = vpop.permute.xlu1 %705 }
 0x19d   : > { %v710_v5 = vsel %vm709_vm11, %v3074_v3, %v706_v52  ;;  %v712_v38 = vsel %vm709_vm11, %v706_v52, %v3074_v3  ;;  %v704_v53 = vpop.permute.xlu0 %703 }
 0x19e   : > { %v721_v57 = vmul.f32 %v717_v51, %v710_v5  ;;  %v722_v63 = vmul.f32 %v718_v15, %v712_v38  ;;  %v711_v0 = vsel %vm709_vm11, %v704_v53, %v708_v48  ;;  %v713_v35 = vsel %vm709_vm11, %v708_v48, %v704_v53 }
 0x19f   : > { %v723_v49 = vmul.f32 %v717_v51, %v711_v0  ;;  %v724_v26 = vmul.f32 %v718_v15, %v713_v35 }
 0x1a0   : > { %v725_v27 = vadd.f32 %v721_v57, %v697_v41  ;;  %v726_v3 = vadd.f32 %v722_v63, %v698_v56 }
 0x1a1   : > { %v727_v30 = vadd.f32 %v723_v49, %v699_v25  ;;  %v728_v32 = vadd.f32 %v724_v26, %v700_v50 }
 0x1a2   : > { %2214 = vset.pattern.permute.xlu1 %v4097_v61  ;;  %2211 = vset.pattern.permute.xlu2 %v2546_v19 }
 0x1a3   : > { %v731_v13 = vpack.c.bf16 %v727_v30, %v725_v27  ;;  %v732_v21 = vpack.c.bf16 %v728_v32, %v726_v3  ;;  %1232 = vperm.xlu1 %2214, %v2818_v16   ;;  %1188 = vperm.xlu2 %2211, %v2823_v17  }
 0x1a5   : > { %761 = vmatpush.bf16.msra.mxu0 %v731_v13  ;;  %775 = vmatpush.bf16.msra.mxu1 %v732_v21 }
 0x1a8   : > { %2045 = vmatmul.msk.bf16.vlgmr.msra.gmra.mxu0 %vm4084_vm12, %v2071_v47  ;;  %2046 = vmatmul.msk.bf16.vlgmr.msra.gmra.mxu1 %vm4084_vm12, %v2071_v47 }
 0x1ab   : > { %2216 = vset.pattern.permute.xlu1 %v4098_v4  ;;  %2215 = vset.pattern.permute.xlu2 %v4098_v4 }
 0x1ac   : > { %1272 = vperm.xlu1 %2216, %v2818_v16   ;;  %1268 = vperm.xlu2 %2215, %v2823_v17   ;;  %v3229_v17 = vpop.permute.xlu1 %918 }
 0x1b4   : > { %2219 = vset.pattern.permute.xlu1 %v2538_v18  ;;  %2217 = vset.pattern.permute.xlu2 %v2547_v43 }
 0x1b5   : > { %1310 = vperm.xlu1 %2219, %v3112_v12   ;;  %1284 = vperm.xlu2 %2217, %v3057_v58   ;;  %v3235_v58 = vpop.permute.xlu2 %1036 }
 0x1bd   : > { %2221 = vset.pattern.permute.xlu1 %v2537_v11  ;;  %2220 = vset.pattern.permute.xlu2 %v2538_v18  ;;  %v3224_v11 = vpop.permute.xlu0 %1192 }
 0x1be   : > { %1350 = vperm.xlu1 %2221, %v3195_v46   ;;  %1315 = vperm.xlu2 %2220, %v3195_v46  }
 0x1c5   : > { %v3227_v16 = vpop.permute.xlu0 %954 }
 0x1c6   : > { %2222 = vset.pattern.permute.xlu1 %v2547_v43  ;;  %2223 = vset.pattern.permute.xlu2 %v2547_v43  ;;  %v3233_v43 = vpop.permute.xlu1 %958 }
 0x1c7   : > { %1386 = vperm.xlu1 %2222, %v3112_v12   ;;  %1390 = vperm.xlu2 %2223, %v3195_v46  }
 0x1cd   : > { %v3231_v18 = vpop.permute.xlu0 %1288 }
 0x1cf   : > { %2224 = vset.pattern.permute.xlu1 %v4095_v54  ;;  %2225 = vset.pattern.permute.xlu2 %v4095_v54 }
 0x1d0   : > { %1425 = vperm.xlu1 %2224, %v3112_v12   ;;  %1429 = vperm.xlu2 %2225, %v3195_v46  }
 0x1d8   : > { %2226 = vset.pattern.permute.xlu1 %v4093_v2  ;;  %2227 = vset.pattern.permute.xlu2 %v4093_v2 }
 0x1d9   : > { %1464 = vperm.xlu1 %2226, %v3112_v12   ;;  %1468 = vperm.xlu2 %2227, %v3195_v46  }
 0x1e1   : > { %2228 = vset.pattern.permute.xlu1 %v2549_v62  ;;  %2229 = vset.pattern.permute.xlu2 %v2549_v62  ;;  %v3237_v62 = vpop.permute.xlu1 %993 }
 0x1e2   : > { %1503 = vperm.xlu1 %2228, %v3112_v12   ;;  %1507 = vperm.xlu2 %2229, %v3195_v46  }
 0x1e9   : > { %v3241_v7 = vpop.permute.xlu1 %1032 }
 0x1ea   : > { %2230 = vset.pattern.permute.xlu1 %v2550_v33  ;;  %2231 = vset.pattern.permute.xlu2 %v2550_v33 }
 0x1eb   : > { %1542 = vperm.xlu1 %2230, %v3112_v12   ;;  %1546 = vperm.xlu2 %2231, %v3195_v46   ;;  %v738_v12 = vpop.permute.xlu0 %737 }
 0x1f1   : > { %v3245_v44 = vpop.permute.xlu1 %1071 }
 0x1f3   : > { %2234 = vset.pattern.permute.xlu1 %v2551_v42  ;;  %2235 = vset.pattern.permute.xlu2 %v2546_v19 }
 0x1f4   : > { %1585 = vperm.xlu1 %2234, %v3195_v46  }
 0x1fc   : > { %2236 = vset.pattern.permute.xlu1 %v2546_v19  ;;  %v3239_v19 = vpop.permute.xlu2 %1075 }
 0x203   : > { %v3253_v57 = vpop.permute.xlu1 %1110 }
 0x204   : > { %v3243_v51 = vpop.permute.xlu2 %1114 }
 0x20c   : > { %v3251_v52 = vpop.permute.xlu2 %1153  ;;  %v3267_v21 = vpop.permute.xlu1 %1149 }
 0x214   : > { %v3265_v32 = vpop.permute.xlu2 %1188 }
 0x225   : > { %v777_v14 = vpop.f32.mrf.mxu1  ;;  %v763_v24 = vpop.f32.mrf.mxu0 }
 0x226   : > { %v778_v39 = vadd.f32 %v777_v14, %v738_v12  ;;  %v764_v6 = vadd.f32 %v763_v24, %v738_v12  ;;  %v3278_v14 = vpop.permute.xlu2 %1268 }
 0x228   : > { %v2048_v9 = vmul.f32 -1.442695, %v778_v39  ;;  %v2047_v10 = vmul.f32 -1.442695, %v764_v6 }
 0x22a   : > { %2244 = vpow2.f32 %v2048_v9 }
 0x22b   : > { %2246 = vpow2.f32 %v2047_v10 }
 0x22d   : > { %v765_v15 = vpop.f32.mrf.mxu0  ;;  %v779_v47 = vpop.f32.mrf.mxu1 }
 0x22e   : > { %v3248_v55 = vadd.f32 %v765_v15, %v3025_v31  ;;  %v3276_v12 = vadd.f32 %v779_v47, %v3025_v31  ;;  %v3289_v10 = vpop.permute.xlu2 %1284 }
 0x230   : > { %v2245_v60 = vpop.eup %2244  ;;  %v2049_v42 = vmul.f32 -1.442695, %v3248_v55 }
 0x231   : > { %v2247_v22 = vpop.eup %2246  ;;  %v795_v28 = vadd.f32 1.0, %v2245_v60 }
 0x232   : > { %v794_v37 = vadd.f32 1.0, %v2247_v22 }
 0x233   : > { %2248 = vrcp.f32 %v795_v28  ;;  %v824_v45 = vand.u32 2147483648, %v795_v28  ;;  %v822_v48 = vand.u32 2147483647, %v795_v28  ;;  %vm818_vm15 = vweird.f32 %v795_v28 }
 0x234   : > { %2250 = vrcp.f32 %v794_v37  ;;  %v809_v5 = vand.u32 2147483648, %v794_v37  ;;  %v807_v53 = vand.u32 2147483647, %v794_v37  ;;  %vm803_vm4 = vweird.f32 %v794_v37 }
 0x235   : > { %2252 = vpow2.f32 %v2049_v42  ;;  %v825_v63 = vor.u32 1.1754944e-38, %v824_v45  ;;  %vm823_vm3 = vcmp.eq.f32.partialorder %v822_v48, 8.507059e+37 }
 0x236   : > { %v810_v49 = vor.u32 1.1754944e-38, %v809_v5  ;;  %vm808_vm1 = vcmp.eq.f32.partialorder %v807_v53, 8.507059e+37 }
 0x239   : > { %v2249_v20 = vpop.eup %2248 }
 0x23a   : > { %v2251_v36 = vpop.eup %2250  ;;  %v814_v40 = vmul.f32 %v2249_v20, %v795_v28  ;;  %vm819_vm13 = vweird.f32 %v2249_v20 }
 0x23b   : > { %v799_v29 = vmul.f32 %v2251_v36, %v794_v37  ;;  %vm804_vm14 = vweird.f32 %v2251_v36  ;;  %vm820_vm12 = vmor %vm818_vm15, %vm819_vm13  ;;  %v2253_v30 = vpop.eup %2252 }
 0x23c   : > { %v815_v33 = vsub.f32 1.0, %v814_v40  ;;  %vm805_vm2 = vmor %vm803_vm4, %vm804_vm14  ;;  %v796_v13 = vadd.f32 1.0, %v2253_v30  ;;  %v3299_v40 = vpop.permute.xlu2 %1315 }
 0x23d   : > { %v800_v59 = vsub.f32 1.0, %v799_v29  ;;  %4128 = vst [vmem:[#allocation16_spill] sm:$0xff] %v3299_v40 }
 0x23e   : > { %v816_v41 = vmul.f32 %v2249_v20, %v815_v33  ;;  %2254 = vrcp.f32 %v796_v13 }
 0x23f   : > { %v801_v38 = vmul.f32 %v2251_v36, %v800_v59 }
 0x240   : > { %v817_v56 = vadd.f32 %v2249_v20, %v816_v41 }
 0x241   : > { %v802_v0 = vadd.f32 %v2251_v36, %v801_v38 }
 0x242   : > { %v821_v35 = vsel %vm820_vm12, %v2249_v20, %v817_v56  ;;  %v839_v20 = vand.u32 2147483648, %v796_v13 }
 0x243   : > { %v826_v26 = vsel %vm823_vm3, %v825_v63, %v821_v35  ;;  %v806_v25 = vsel %vm805_vm2, %v2251_v36, %v802_v0  ;;  %vm833_vm2 = vweird.f32 %v796_v13  ;;  %v837_v36 = vand.u32 2147483647, %v796_v13 }
 0x244   : > { %v3255_v50 = vmul.f32 %v826_v26, %v778_v39  ;;  %v811_v27 = vsel %vm808_vm1, %v810_v49, %v806_v25  ;;  %v2255_v24 = vpop.eup %2254  ;;  %v3280_v39 = vpop.permute.xlu1 %1232  ;;  %v840_v33 = vor.u32 1.1754944e-38, %v839_v20 }
 0x245   : > { %v3257_v3 = vmul.f32 %v811_v27, %v764_v6  ;;  %v2050_v6 = vmul.f32 -1.442695, %v3276_v12  ;;  %v829_v9 = vmul.f32 %v2255_v24, %v796_v13  ;;  %vm834_vm1 = vweird.f32 %v2255_v24  ;;  %v3318_v5 = vpop.permute.xlu2 %1390 }
 0x246   : > { %893 = vrot.lane.b32.xlu1 %v3255_v50, %s2554_s1  ;;  %vm835_vm3 = vmor %vm833_vm2, %vm834_vm1  ;;  %vm838_vm4 = vcmp.eq.f32.partialorder %v837_v36, 8.507059e+37  ;;  %4129 = vst [vmem:[#allocation17_spill] sm:$0xff] %v3318_v5  ;;  %vm897_vm1 = vcmp.lt.s32.totalorder %v2833_v23, 5  ;;  %vm937_vm2 = vcmp.lt.s32.totalorder %v2833_v23, 4 }
 0x247   : > { %1008 = vrot.lane.b32.xlu0 %v3257_v3, %s2540_s21  ;;  %889 = vrot.lane.b32.xlu2 %v3257_v3, %s2554_s1  ;;  %2256 = vpow2.f32 %v2050_v6  ;;  %v830_v31 = vsub.f32 1.0, %v829_v9  ;;  %v915_v6 = vpop.permute.xlu0 %914 }
 0x249   : > { %v831_v60 = vmul.f32 %v2255_v24, %v830_v31 }
 0x24b   : > { %v832_v37 = vadd.f32 %v2255_v24, %v831_v60 }
 0x24c   : > { %v3293_v22 = vpop.permute.xlu1 %1272 }
 0x24d   : > { %v2257_v28 = vpop.eup %2256  ;;  %v836_v29 = vsel %vm835_vm3, %v2255_v24, %v832_v37  ;;  %v3328_v56 = vpop.permute.xlu2 %1429  ;;  %vm1251_vm3 = vcmp.lt.s32.totalorder %v2833_v23, 123 }
 0x24e   : > { %933 = vrot.lane.b32.xlu1 %v3255_v50, %s2555_s29  ;;  %v797_v15 = vadd.f32 1.0, %v2257_v28  ;;  %v841_v45 = vsel %vm838_vm4, %v840_v33, %v836_v29  ;;  %4131 = vst [vmem:[#allocation19_spill] sm:$0xff] %v3328_v56  ;;  %vm1211_vm4 = vcmp.lt.s32.totalorder %v2833_v23, 124 }
 0x24f   : > { %1047 = vrot.lane.b32.xlu0 %v3257_v3, %s2541_s18  ;;  %929 = vrot.lane.b32.xlu2 %v3257_v3, %s2555_s29  ;;  %v3310_v41 = vmul.f32 %v841_v45, %v3248_v55  ;;  %v3371_v60 = vpop.permute.xlu0 %1346 }
 0x250   : > { %2258 = vrcp.f32 %v797_v15  ;;  %v854_v0 = vand.u32 2147483648, %v797_v15  ;;  %vm848_vm13 = vweird.f32 %v797_v15  ;;  %v852_v49 = vand.u32 2147483647, %v797_v15 }
 0x252   : > { %v855_v25 = vor.u32 1.1754944e-38, %v854_v0  ;;  %vm853_vm15 = vcmp.eq.f32.partialorder %v852_v49, 8.507059e+37  ;;  %v3395_v0 = vld [vmem:[#allocation8 + $0x16] ss:$8 sm:$0x3] }
 0x253   : > { %v3397_v49 = vld [vmem:[#allocation8 + $0x23] ss:$8 sm:$0x3]  ;;  %v4140_v5 = vperm.slane %v3395_v0, 1 }
 0x254   : > { %v3307_v42 = vpop.permute.xlu1 %1310  ;;  %v4142_v40 = vperm.slane %v3397_v49, 1 }
 0x255   : > { %v3338_v30 = vpop.permute.xlu2 %1468 }
 0x256   : > { %1203 = vrot.lane.b32.xlu1 %v3257_v3, %s2556_s16  ;;  %v2259_v59 = vpop.eup %2258  ;;  %4132 = vst [vmem:[#allocation20_spill] sm:$0xff] %v3338_v30  ;;  %v4139_v30 = vperm.slane %v3395_v0, 0 }
 0x257   : > { %1086 = vrot.lane.b32.xlu0 %v3257_v3, %s2543_s22  ;;  %969 = vrot.lane.b32.xlu2 %v3257_v3, %s2539_s15  ;;  %v844_v48 = vmul.f32 %v2259_v59, %v797_v15  ;;  %vm849_vm12 = vweird.f32 %v2259_v59  ;;  %v3381_v15 = vpop.permute.xlu0 %1581 }
 0x258   : > { %vm850_vm14 = vmor %vm848_vm13, %vm849_vm12  ;;  %4137 = vst [vmem:[#allocation25_spill] sm:$0xff] %v3381_v15  ;;  %vm4178_vm13 = vcmp.lt.s32.totalorder %v2833_v23, 96 }
 0x259   : > { %v845_v53 = vsub.f32 1.0, %v844_v48 }
 0x25b   : > { %v846_v55 = vmul.f32 %v2259_v59, %v845_v53 }
 0x25c   : > { %v3320_v38 = vpop.permute.xlu1 %1350 }
 0x25d   : > { %4130 = vst [vmem:[#allocation18_spill] sm:$0xff] %v3320_v38  ;;  %v847_v63 = vadd.f32 %v2259_v59, %v846_v55  ;;  %v3351_v24 = vpop.permute.xlu2 %1507  ;;  %v870_v38 = vmul.f32 %v4142_v40, %v3255_v50  ;;  %v3443_v40 = vld [vmem:[#allocation8 + $0x22] ss:$8 sm:$0x3] }
 0x25e   : > { %1243 = vrot.lane.b32.xlu1 %v3257_v3, %s2557_s10  ;;  %4133 = vst [vmem:[#allocation21_spill] sm:$0xff] %v3351_v24 }
 0x25f   : > { %1125 = vrot.lane.b32.xlu0 %v3257_v3, %s2544_s13  ;;  %973 = vrot.lane.b32.xlu2 %v3255_v50, %s2539_s15  ;;  %v851_v26 = vsel %vm850_vm14, %v2259_v59, %v847_v63  ;;  %v3393_v29 = vpop.permute.xlu0 %1228  ;;  %vm4179_vm14 = vmmov %vm4178_vm13 }
 0x260   : > { %v856_v27 = vsel %vm853_vm15, %v855_v25, %v851_v26  ;;  %v3400_v26 = vld [vmem:[#allocation8 + $0x17] ss:$8 sm:$0x3] }
 0x261   : > { %v3341_v13 = vmul.f32 %v856_v27, %v3276_v12  ;;  %v4144_v15 = vperm.slane %v3400_v26, 1 }
 0x264   : > { %v3330_v35 = vpop.permute.xlu1 %1386 }
 0x265   : > { %v3367_v9 = vpop.permute.xlu2 %1546 }
 0x266   : > { %1247 = vrot.lane.b32.xlu1 %v3255_v50, %s2557_s10  ;;  %4134 = vst [vmem:[#allocation22_spill] sm:$0xff] %v3367_v9  ;;  %v4141_v9 = vperm.slane %v3397_v49, 0 }
 0x267   : > { %1164 = vrot.lane.b32.xlu0 %v3257_v3, %s2545_s9  ;;  %1012 = vrot.lane.b32.xlu2 %v3255_v50, %s2540_s21 }
 0x26c   : > { %v3345_v47 = vpop.permute.xlu1 %1425 }
 0x26e   : > { %971 = vrot.lane.b32.xlu1 %v3310_v41, %s2539_s15 }
 0x26f   : > { %1207 = vrot.lane.b32.xlu0 %v3255_v50, %s2556_s16  ;;  %1051 = vrot.lane.b32.xlu2 %v3255_v50, %s2541_s18 }
 0x274   : > { %v3359_v12 = vpop.permute.xlu1 %1464 }
 0x276   : > { %1010 = vrot.lane.b32.xlu1 %v3310_v41, %s2540_s21 }
 0x277   : > { %891 = vrot.lane.b32.xlu0 %v3310_v41, %s2554_s1  ;;  %1090 = vrot.lane.b32.xlu2 %v3255_v50, %s2543_s22 }
 0x27c   : > { %v3369_v31 = vpop.permute.xlu1 %1503 }
 0x27d   : > { %4135 = vst [vmem:[#allocation23_spill] sm:$0xff] %v3369_v31 }
 0x27e   : > { %1049 = vrot.lane.b32.xlu1 %v3310_v41, %s2541_s18 }
 0x27f   : > { %931 = vrot.lane.b32.xlu0 %v3310_v41, %s2555_s29  ;;  %1129 = vrot.lane.b32.xlu2 %v3255_v50, %s2544_s13 }
 0x284   : > { %v3379_v37 = vpop.permute.xlu1 %1542 }
 0x285   : > { %4136 = vst [vmem:[#allocation24_spill] sm:$0xff] %v3379_v37 }
 0x286   : > { %1088 = vrot.lane.b32.xlu1 %v3310_v41, %s2543_s22 }
 0x287   : > { %975 = vrot.lane.b32.xlu0 %v3341_v13, %s2539_s15  ;;  %1168 = vrot.lane.b32.xlu2 %v3255_v50, %s2545_s9  ;;  %s4163_s15 = smov 96  }
 0x28c   : > { %v3387_v36 = vpop.permute.xlu1 %1585 }
 0x28d   : > { %4138 = vst [vmem:[#allocation26_spill] sm:$0xff] %v3387_v36  ;;  %v869_v36 = vmul.f32 %v4141_v9, %v3257_v3  ;;  %v886_v9 = vmul.f32 %v3023_v8, %v870_v38 }
 0x28e   : > { %1127 = vrot.lane.b32.xlu1 %v3310_v41, %s2544_s13 }
 0x28f   : > { %1014 = vrot.lane.b32.xlu0 %v3341_v13, %s2540_s21  ;;  %895 = vrot.lane.b32.xlu2 %v3341_v13, %s2554_s1  ;;  %s2465_s21 = scalar_lea.hbm %s4080_s7, 64 }
 0x296   : > { %1166 = vrot.lane.b32.xlu1 %v3310_v41, %s2545_s9 }
 0x297   : > { %1053 = vrot.lane.b32.xlu0 %v3341_v13, %s2541_s18  ;;  %935 = vrot.lane.b32.xlu2 %v3341_v13, %s2555_s29  ;;  %s4201_s18 = sshll.u32 %s2720_s14, 5 }
 0x29e   : > { %1209 = vrot.lane.b32.xlu1 %v3341_v13, %s2556_s16 }
 0x29f   : > { %1092 = vrot.lane.b32.xlu0 %v3341_v13, %s2543_s22  ;;  %1205 = vrot.lane.b32.xlu2 %v3310_v41, %s2556_s16  ;;  %s4159_s16 = smov 112   ;;  %s4032_s22 = scalar_lea.vmem [#allocation11], %s4201_s18 }
 0x2a1   : > { %v890_v28 = vpop.permute.xlu2 %889 }
 0x2a7   : > { %1131 = vrot.lane.b32.xlu0 %v3341_v13, %s2544_s13  ;;  %1245 = vrot.lane.b32.xlu2 %v3310_v41, %s2557_s10  ;;  %s2073_s13 = sshll.u32 %s2621_s28, 5  ;;  %s1910_s28 = sshll.u32 %s4032_s22, 4  ;;  %s1911_s28 = int_to_ptr.vmem [resolvable:$true] %s1910_s28 }
 0x2a8   : > { %s1909_s29 = scalar_lea.hbm %s4080_s7, %s2073_s13 }
 0x2a9   : > { %v930_v20 = vpop.permute.xlu2 %929 }
 0x2af   : > { %1170 = vrot.lane.b32.xlu0 %v3341_v13, %s2545_s9  ;;  %1249 = vrot.lane.b32.xlu2 %v3341_v13, %s2557_s10  ;;  %s2558_s10 = smov 64  }
 0x2b1   : > { %v970_v33 = vpop.permute.xlu2 %969 }
 0x2b8   : > { %v894_v45 = vpop.permute.xlu1 %893 }
 0x2b9   : > { %v1009_v59 = vpop.permute.xlu0 %1008  ;;  %v974_v48 = vpop.permute.xlu2 %973  ;;  %v898_v61 = vsel %vm897_vm1, %v890_v28, %v894_v45  ;;  %v900_v4 = vsel %vm897_vm1, %v894_v45, %v890_v28  ;;  %v3423_v45 = vld [vmem:[#allocation8 + $0x20] ss:$8 sm:$0x3] }
 0x2ba   : > { %v909_v56 = vmul.f32 %v4139_v30, %v900_v4  ;;  %v910_v28 = vmul.f32 %v4140_v5, %v898_v61  ;;  %v4112_v4 = vperm.slane %v3423_v45, 0  ;;  %v4111_v61 = vperm.slane %v3423_v45, 1  ;;  %v3437_v5 = vld [vmem:[#allocation8 + $0x21] ss:$8 sm:$0x3] }
 0x2bb   : > { %v977_v3 = vsel %vm569_vm6, %v970_v33, %v974_v48  ;;  %v979_v50 = vsel %vm569_vm6, %v974_v48, %v970_v33  ;;  %v3459_v48 = vld [vmem:[#allocation8 + $0x24] ss:$8 sm:$0x3] }
 0x2bc   : > { %v921_v30 = vmul.f32 %v915_v6, %v909_v56  ;;  %v922_v31 = vmul.f32 %v915_v6, %v910_v28  ;;  %v988_v28 = vmul.f32 %v4112_v4, %v979_v50  ;;  %v989_v33 = vmul.f32 %v4111_v61, %v977_v3 }
 0x2c0   : > { %v934_v53 = vpop.permute.xlu1 %933 }
 0x2c1   : > { %v1048_v55 = vpop.permute.xlu0 %1047  ;;  %v1013_v63 = vpop.permute.xlu2 %1012  ;;  %v938_v27 = vsel %vm937_vm2, %v930_v20, %v934_v53  ;;  %v940_v2 = vsel %vm937_vm2, %v934_v53, %v930_v20  ;;  %v4143_v20 = vperm.slane %v3400_v26, 0 }
 0x2c2   : > { %v950_v37 = vmul.f32 %v4144_v15, %v938_v27  ;;  %v1016_v56 = vsel %vm597_vm7, %v1009_v59, %v1013_v63 }
 0x2c3   : > { %v949_v53 = vmul.f32 %v4143_v20, %v940_v2  ;;  %v885_v2 = vmul.f32 %v3023_v8, %v869_v36  ;;  %v1018_v20 = vsel %vm597_vm7, %v1013_v63, %v1009_v59  ;;  %v4117_v8 = vperm.slane %v3459_v48, 0 }
 0x2c4   : > { %v962_v27 = vmul.f32 %v3227_v16, %v950_v37  ;;  %v4113_v36 = vperm.slane %v3459_v48, 1 }
 0x2c5   : > { %v961_v15 = vmul.f32 %v3227_v16, %v949_v53  ;;  %v925_v37 = vadd.f32 %v921_v30, %v885_v2  ;;  %v926_v53 = vadd.f32 %v922_v31, %v886_v9  ;;  %v4145_v31 = vperm.slane %v3437_v5, 0 }
 0x2c6   : > { %v4146_v2 = vperm.slane %v3437_v5, 1 }
 0x2c7   : > { %v965_v61 = vadd.f32 %v961_v15, %v925_v37  ;;  %v966_v4 = vadd.f32 %v962_v27, %v926_v53  ;;  %v1027_v30 = vmul.f32 %v4145_v31, %v1018_v20  ;;  %v4147_v15 = vperm.slane %v3443_v40, 0  ;;  %v3485_v20 = vld [vmem:[#allocation8 + $0x25] ss:$8 sm:$0x3] }
 0x2c8   : > { %v3413_v24 = vpop.permute.xlu1 %1203  ;;  %v1028_v9 = vmul.f32 %v4146_v2, %v1016_v56  ;;  %v4148_v37 = vperm.slane %v3443_v40, 1 }
 0x2c9   : > { %v1087_v25 = vpop.permute.xlu0 %1086  ;;  %v1052_v54 = vpop.permute.xlu2 %1051 }
 0x2ca   : > { %v1055_v50 = vsel %vm625_vm8, %v1048_v55, %v1052_v54  ;;  %v1057_v3 = vsel %vm625_vm8, %v1052_v54, %v1048_v55  ;;  %v1000_v54 = vmul.f32 %v3237_v62, %v988_v28  ;;  %v1001_v55 = vmul.f32 %v3237_v62, %v989_v33 }
 0x2cb   : > { %v1066_v27 = vmul.f32 %v4147_v15, %v1057_v3  ;;  %v1067_v53 = vmul.f32 %v4148_v37, %v1055_v50  ;;  %v1039_v28 = vmul.f32 %v3241_v7, %v1027_v30  ;;  %v1040_v62 = vmul.f32 %v3241_v7, %v1028_v9  ;;  %v3505_v37 = vld [vmem:[#allocation8 + $0x26] ss:$8 sm:$0x3] }
 0x2cc   : > { %v1005_v31 = vadd.f32 %v1001_v55, %v966_v4  ;;  %v1004_v56 = vadd.f32 %v1000_v54, %v965_v61  ;;  %v4115_v3 = vperm.slane %v3485_v20, 0  ;;  %v4114_v50 = vperm.slane %v3485_v20, 1  ;;  %v3503_v55 = vld [vmem:[#allocation8 + $0x27] ss:$8 sm:$0x3] }
 0x2cd   : > { %v1078_v4 = vmul.f32 %v3245_v44, %v1066_v27  ;;  %v1079_v61 = vmul.f32 %v3245_v44, %v1067_v53 }
 0x2ce   : > { %v1043_v54 = vadd.f32 %v1039_v28, %v1004_v56  ;;  %v1044_v30 = vadd.f32 %v1040_v62, %v1005_v31  ;;  %v1220_v31 = vperm.slane %v3503_v55, 1  ;;  %v4116_v56 = vperm.slane %v3505_v37, 0 }
 0x2d0   : > { %v3451_v6 = vpop.permute.xlu1 %1243  ;;  %v1082_v53 = vadd.f32 %v1078_v4, %v1043_v54 }
 0x2d1   : > { %v1126_v38 = vpop.permute.xlu0 %1125  ;;  %v1091_v16 = vpop.permute.xlu2 %1090 }
 0x2d2   : > { %v1094_v59 = vsel %vm653_vm9, %v1087_v25, %v1091_v16  ;;  %v1096_v63 = vsel %vm653_vm9, %v1091_v16, %v1087_v25 }
 0x2d3   : > { %v1105_v2 = vmul.f32 %v4117_v8, %v1094_v59  ;;  %v1106_v25 = vmul.f32 %v4113_v36, %v1096_v63  ;;  %v3507_v36 = vld [vmem:[#allocation8 + $0x30] ss:$8 sm:$0x3] }
 0x2d4   : > { %v1259_v62 = vperm.slane %v3507_v36, 0 }
 0x2d5   : > { %v1117_v7 = vmul.f32 %v3253_v57, %v1105_v2  ;;  %v1118_v9 = vmul.f32 %v3253_v57, %v1106_v25  ;;  %v1219_v57 = vperm.slane %v3503_v55, 0  ;;  %v1180_v2 = vperm.slane %v3505_v37, 1 }
 0x2d7   : > { %v1121_v25 = vadd.f32 %v1117_v7, %v1082_v53 }
 0x2d8   : > { %v1248_v16 = vpop.permute.xlu1 %1247 }
 0x2d9   : > { %v1165_v33 = vpop.permute.xlu0 %1164  ;;  %v1130_v15 = vpop.permute.xlu2 %1129 }
 0x2da   : > { %v1133_v59 = vsel %vm681_vm10, %v1126_v38, %v1130_v15  ;;  %v1135_v63 = vsel %vm681_vm10, %v1130_v15, %v1126_v38  ;;  %v1083_v38 = vadd.f32 %v1079_v61, %v1044_v30  ;;  %v1260_v15 = vperm.slane %v3507_v36, 1 }
 0x2db   : > { %v1144_v44 = vmul.f32 %v4115_v3, %v1133_v59  ;;  %v1145_v27 = vmul.f32 %v4114_v50, %v1135_v63  ;;  %v1252_v61 = vsel %vm1251_vm3, %v3451_v6, %v1248_v16  ;;  %v1254_v59 = vsel %vm1251_vm3, %v1248_v16, %v3451_v6 }
 0x2dc   : > { %v1122_v28 = vadd.f32 %v1118_v9, %v1083_v38 }
 0x2dd   : > { %v1156_v63 = vmul.f32 %v3267_v21, %v1144_v44  ;;  %v1157_v54 = vmul.f32 %v3267_v21, %v1145_v27 }
 0x2df   : > { %v1160_v50 = vadd.f32 %v1156_v63, %v1121_v25 }
 0x2e0   : > { %v3521_v4 = vpop.permute.xlu1 %971 }
 0x2e1   : > { %v1208_v30 = vpop.permute.xlu0 %1207  ;;  %v1169_v7 = vpop.permute.xlu2 %1168 }
 0x2e2   : > { %v1212_v9 = vsel %vm1211_vm4, %v3413_v24, %v1208_v30  ;;  %v1214_v53 = vsel %vm1211_vm4, %v1208_v30, %v3413_v24  ;;  %v1172_v38 = vsel %vm709_vm11, %v1165_v33, %v1169_v7  ;;  %v1174_v6 = vsel %vm709_vm11, %v1169_v7, %v1165_v33 }
 0x2e3   : > { %v1223_v16 = vmul.f32 %v1219_v57, %v1212_v9  ;;  %v1224_v21 = vmul.f32 %v1220_v31, %v1214_v53  ;;  %v1183_v44 = vmul.f32 %v4116_v56, %v1172_v38  ;;  %v1184_v27 = vmul.f32 %v1180_v2, %v1174_v6 }
 0x2e4   : > { %v1263_v24 = vmul.f32 %v1259_v62, %v1252_v61  ;;  %v1264_v30 = vmul.f32 %v1260_v15, %v1254_v59  ;;  %v1161_v33 = vadd.f32 %v1157_v54, %v1122_v28  ;;  %v4149_v6 = vperm.slane %v3397_v49, 0 }
 0x2e5   : > { %v1195_v7 = vmul.f32 %v3265_v32, %v1183_v44  ;;  %v1196_v9 = vmul.f32 %v3265_v32, %v1184_v27  ;;  %v1235_v53 = vmul.f32 %v3393_v29, %v1223_v16  ;;  %v1236_v3 = vmul.f32 %v3393_v29, %v1224_v21 }
 0x2e6   : > { %v871_v61 = vmul.f32 %v4149_v6, %v3310_v41  ;;  %v4150_v59 = vperm.slane %v3397_v49, 1  ;;  %v1275_v28 = vmul.f32 %v3278_v14, %v1263_v24  ;;  %v1276_v63 = vmul.f32 %v3278_v14, %v1264_v30 }
 0x2e7   : > { %v1199_v38 = vadd.f32 %v1195_v7, %v1160_v50  ;;  %v1200_v56 = vadd.f32 %v1196_v9, %v1161_v33  ;;  %v4151_v27 = vperm.slane %v3395_v0, 0  ;;  %v4153_v6 = vperm.slane %v3400_v26, 0 }
 0x2e8   : > { %v1011_v8 = vpop.permute.xlu1 %1010  ;;  %v872_v25 = vmul.f32 %v4150_v59, %v3341_v13  ;;  %v4152_v13 = vperm.slane %v3395_v0, 1  ;;  %v887_v14 = vmul.f32 %v3029_v34, %v871_v61  ;;  %v4154_v59 = vperm.slane %v3400_v26, 1 }
 0x2e9   : > { %v1239_v32 = vadd.f32 %v1235_v53, %v1199_v38  ;;  %v1240_v54 = vadd.f32 %v1236_v3, %v1200_v56  ;;  %v892_v16 = vpop.permute.xlu0 %891  ;;  %v896_v44 = vpop.permute.xlu2 %895 }
 0x2ea   : > { %v899_v29 = vsel %vm897_vm1, %v892_v16, %v896_v44  ;;  %v901_v50 = vsel %vm897_vm1, %v896_v44, %v892_v16  ;;  %v888_v3 = vmul.f32 %v3029_v34, %v872_v25 }
 0x2eb   : > { %v1279_v21 = vadd.f32 %v1275_v28, %v1239_v32  ;;  %v1280_v41 = vadd.f32 %v1276_v63, %v1240_v54  ;;  %v911_v49 = vmul.f32 %v4151_v27, %v901_v50  ;;  %v912_v24 = vmul.f32 %v4152_v13, %v899_v29 }
 0x2ec   : > { %v4155_v50 = vperm.slane %v3423_v45, 0 }
 0x2ed   : > { %v3576_v56 = vadd.f32 %v3289_v10, %v1279_v21  ;;  %v3579_v30 = vadd.f32 %v3289_v10, %v1280_v41  ;;  %v923_v33 = vmul.f32 %v3229_v17, %v911_v49  ;;  %v924_v7 = vmul.f32 %v3229_v17, %v912_v24 }
 0x2ee   : > { %v4156_v41 = vperm.slane %v3423_v45, 1 }
 0x2ef   : > { %v927_v9 = vadd.f32 %v923_v33, %v887_v14  ;;  %v928_v53 = vadd.f32 %v924_v7, %v888_v3  ;;  %1365 = vrot.lane.b32.xlu2 %v3579_v30, %s2558_s10  ;;  %1361 = vrot.lane.b32.xlu0 %v3576_v56, %s2558_s10 }
 0x2f0   : > { %1322 = vrot.lane.b32.xlu1 %v3576_v56, %s2536_s17  ;;  %v1050_v34 = vpop.permute.xlu1 %1049 }
 0x2f1   : > { %v932_v0 = vpop.permute.xlu0 %931  ;;  %v936_v10 = vpop.permute.xlu2 %935 }
 0x2f2   : > { %v939_v38 = vsel %vm937_vm2, %v932_v0, %v936_v10  ;;  %v941_v17 = vsel %vm937_vm2, %v936_v10, %v932_v0 }
 0x2f3   : > { %v951_v61 = vmul.f32 %v4153_v6, %v941_v17  ;;  %v952_v25 = vmul.f32 %v4154_v59, %v939_v38 }
 0x2f5   : > { %v963_v28 = vmul.f32 %v3233_v43, %v951_v61  ;;  %v964_v63 = vmul.f32 %v3233_v43, %v952_v25 }
 0x2f7   : > { %v967_v32 = vadd.f32 %v963_v28, %v927_v9  ;;  %v968_v54 = vadd.f32 %v964_v63, %v928_v53  ;;  %1401 = vrot.lane.b32.xlu2 %v3576_v56, %s2531_s12  ;;  %1440 = vrot.lane.b32.xlu0 %v3576_v56, %s2532_s30  ;;  %v4158_v53 = vperm.slane %v3437_v5, 1 }
 0x2f8   : > { %1326 = vrot.lane.b32.xlu1 %v3579_v30, %s2536_s17  ;;  %v1089_v16 = vpop.permute.xlu1 %1088 }
 0x2f9   : > { %v976_v44 = vpop.permute.xlu0 %975  ;;  %v1206_v29 = vpop.permute.xlu2 %1205 }
 0x2fa   : > { %v978_v26 = vsel %vm569_vm6, %v3521_v4, %v976_v44  ;;  %v980_v43 = vsel %vm569_vm6, %v976_v44, %v3521_v4  ;;  %v4162_v44 = vperm.slane %v3443_v40, 1  ;;  %vm1369_vm6 = vcmp.lt.s32.totalorder %v2833_v23, 64 }
 0x2fb   : > { %v990_v21 = vmul.f32 %v4155_v50, %v980_v43  ;;  %v991_v27 = vmul.f32 %v4156_v41, %v978_v26 }
 0x2fd   : > { %v1002_v49 = vmul.f32 %v3129_v1, %v990_v21  ;;  %v1003_v13 = vmul.f32 %v3129_v1, %v991_v27  ;;  %v4157_v1 = vperm.slane %v3437_v5, 0 }
 0x2ff   : > { %v1006_v24 = vadd.f32 %v1002_v49, %v967_v32  ;;  %v1007_v14 = vadd.f32 %v1003_v13, %v968_v54  ;;  %1405 = vrot.lane.b32.xlu2 %v3579_v30, %s2531_s12  ;;  %1479 = vrot.lane.b32.xlu0 %v3576_v56, %s2533_s23  ;;  %v4161_v32 = vperm.slane %v3443_v40, 0 }
 0x300   : > { %v1128_v3 = vpop.permute.xlu1 %1127  ;;  %1612 = vperm.xlu1 %2236, %v3195_v46  }
 0x301   : > { %v1015_v4 = vpop.permute.xlu0 %1014  ;;  %v1246_v33 = vpop.permute.xlu2 %1245 }
 0x302   : > { %v1017_v45 = vsel %vm597_vm7, %v1011_v8, %v1015_v4  ;;  %v1019_v7 = vsel %vm597_vm7, %v1015_v4, %v1011_v8  ;;  %v4160_v8 = vmov 10   ;;  %vm4172_vm7 = vcmp.lt.s32.totalorder %v2833_v23, 32 }
 0x303   : > { %v1029_v9 = vmul.f32 %v4157_v1, %v1019_v7  ;;  %v1030_v0 = vmul.f32 %v4158_v53, %v1017_v45  ;;  %v4167_v53 = vperm.slane %v3485_v20, 1 }
 0x305   : > { %v1041_v10 = vmul.f32 %v3235_v58, %v1029_v9  ;;  %v1042_v38 = vmul.f32 %v3235_v58, %v1030_v0  ;;  %v4166_v9 = vperm.slane %v3485_v20, 0 }
 0x307   : > { %v1045_v17 = vadd.f32 %v1041_v10, %v1006_v24  ;;  %v1046_v6 = vadd.f32 %v1042_v38, %v1007_v14  ;;  %1444 = vrot.lane.b32.xlu2 %v3579_v30, %s2532_s30  ;;  %1518 = vrot.lane.b32.xlu0 %v3576_v56, %s4159_s16  ;;  %v4164_v14 = vperm.slane %v3459_v48, 0 }
 0x308   : > { %v1167_v61 = vpop.permute.xlu1 %1166  ;;  %2238 = vset.pattern.permute.xlu1 %v4160_v8 }
 0x309   : > { %v1054_v59 = vpop.permute.xlu0 %1053  ;;  %v1250_v25 = vpop.permute.xlu2 %1249 }
 0x30a   : > { %v1056_v5 = vsel %vm625_vm8, %v1050_v34, %v1054_v59  ;;  %v1058_v28 = vsel %vm625_vm8, %v1054_v59, %v1050_v34  ;;  %v1253_v58 = vsel %vm1251_vm3, %v1246_v33, %v1250_v25  ;;  %v1255_v63 = vsel %vm1251_vm3, %v1250_v25, %v1246_v33  ;;  %vm4173_vm8 = vmmov %vm4172_vm7 }
 0x30b   : > { %v1068_v54 = vmul.f32 %v4161_v32, %v1058_v28  ;;  %v1069_v26 = vmul.f32 %v4162_v44, %v1056_v5  ;;  %v1265_v43 = vmul.f32 %v1259_v62, %v1253_v58  ;;  %v1266_v50 = vmul.f32 %v1260_v15, %v1255_v63 }
 0x30c   : > { %v4165_v33 = vperm.slane %v3459_v48, 1  ;;  %v4168_v25 = vperm.slane %v3505_v37, 0 }
 0x30d   : > { %v1080_v34 = vmul.f32 %v3239_v19, %v1068_v54  ;;  %v1081_v21 = vmul.f32 %v3239_v19, %v1069_v26  ;;  %v1277_v44 = vmul.f32 %v3293_v22, %v1265_v43 }
 0x30f   : > { %v1084_v41 = vadd.f32 %v1080_v34, %v1045_v17  ;;  %v1085_v27 = vadd.f32 %v1081_v21, %v1046_v6  ;;  %1483 = vrot.lane.b32.xlu2 %v3579_v30, %s2533_s23  ;;  %1557 = vrot.lane.b32.xlu0 %v3576_v56, %s4163_s15 }
 0x310   : > { %v1210_v40 = vpop.permute.xlu1 %1209 }
 0x311   : > { %v1213_v49 = vsel %vm1211_vm4, %v1206_v29, %v1210_v40  ;;  %v1215_v36 = vsel %vm1211_vm4, %v1210_v40, %v1206_v29  ;;  %v1093_v62 = vpop.permute.xlu0 %1092  ;;  %vm4196_vm4 = vmmov %vm4178_vm13 }
 0x312   : > { %v1225_v15 = vmul.f32 %v1219_v57, %v1213_v49  ;;  %v1226_v19 = vmul.f32 %v1220_v31, %v1215_v36  ;;  %v1095_v13 = vsel %vm653_vm9, %v1089_v16, %v1093_v62  ;;  %v1097_v24 = vsel %vm653_vm9, %v1093_v62, %v1089_v16  ;;  %v3756_v62 = vld [vmem:[#allocation8 + $0x36] ss:$8 sm:$0x3] }
 0x313   : > { %v1107_v4 = vmul.f32 %v4164_v14, %v1095_v13  ;;  %v1108_v45 = vmul.f32 %v4165_v33, %v1097_v24  ;;  %v1299_v13 = vperm.slane %v3756_v62, 1  ;;  %v3762_v24 = vld [vmem:[#allocation8 + $0x31] ss:$8 sm:$0x3]  ;;  %vm4174_vm9 = vcmp.lt.s32.totalorder %v2833_v23, 16 }
 0x314   : > { %v1237_v58 = vmul.f32 %v3280_v39, %v1225_v15  ;;  %v1238_v63 = vmul.f32 %v3280_v39, %v1226_v19  ;;  %v3758_v19 = vld [vmem:[#allocation8 + $0x32] ss:$8 sm:$0x3]  ;;  %v3764_v14 = vld [vmem:[#allocation8 + $0x33] ss:$8 sm:$0x3] }
 0x315   : > { %v1119_v29 = vmul.f32 %v3243_v51, %v1107_v4  ;;  %v1120_v7 = vmul.f32 %v3243_v51, %v1108_v45  ;;  %v1377_v4 = vperm.slane %v3758_v19, 0  ;;  %v1378_v33 = vperm.slane %v3758_v19, 1  ;;  %v4186_v19 = vld [vmem:[#allocation16_spill] sm:$0xff] }
 0x316   : > { %v4171_v45 = vmov 3  }
 0x317   : > { %v1123_v57 = vadd.f32 %v1119_v29, %v1084_v41  ;;  %v1124_v1 = vadd.f32 %v1120_v7, %v1085_v27  ;;  %1522 = vrot.lane.b32.xlu2 %v3579_v30, %s4159_s16  ;;  %v2293_v27 = vld [vmem:[%s4079_s6 + $0x8] sm:$0xff]  ;;  %v1337_v29 = vperm.slane %v3762_v24, 0  ;;  %v1338_v7 = vperm.slane %v3762_v24, 1 }
 0x319   : > { %v1132_v55 = vpop.permute.xlu0 %1131 }
 0x31a   : > { %v1134_v31 = vsel %vm681_vm10, %v1128_v3, %v1132_v55  ;;  %v1136_v16 = vsel %vm681_vm10, %v1132_v55, %v1128_v3  ;;  %v1303_v55 = vmul.f32 %v1299_v13, %v3579_v30  ;;  %vm4175_vm10 = vmmov %vm4174_vm9 }
 0x31b   : > { %v1146_v48 = vmul.f32 %v4166_v9, %v1134_v31  ;;  %v1147_v0 = vmul.f32 %v4167_v53, %v1136_v16  ;;  %v1416_v16 = vperm.slane %v3764_v14, 0  ;;  %v1417_v9 = vperm.slane %v3764_v14, 1 }
 0x31d   : > { %v1158_v51 = vmul.f32 %v3251_v52, %v1146_v48  ;;  %v1159_v10 = vmul.f32 %v3251_v52, %v1147_v0 }
 0x31f   : > { %v1162_v38 = vadd.f32 %v1158_v51, %v1123_v57  ;;  %v1163_v17 = vadd.f32 %v1159_v10, %v1124_v1  ;;  %1561 = vrot.lane.b32.xlu2 %v3579_v30, %s4163_s15  ;;  %v2294_v57 = vld [vmem:[%s4079_s6] sm:$0xff] }
 0x320   : > { %v3775_v1 = vld [vmem:[#allocation8 + $0x34] ss:$8 sm:$0x3] }
 0x321   : > { %v1171_v6 = vpop.permute.xlu0 %1170 }
 0x322   : > { %v1173_v59 = vsel %vm709_vm11, %v1167_v61, %v1171_v6  ;;  %v1175_v3 = vsel %vm709_vm11, %v1171_v6, %v1167_v61  ;;  %v1278_v61 = vmul.f32 %v3293_v22, %v1266_v50  ;;  %v4170_v50 = vmov 2  }
 0x323   : > { %v1185_v20 = vmul.f32 %v4168_v25, %v1173_v59  ;;  %v1186_v5 = vmul.f32 %v1180_v2, %v1175_v3  ;;  %v1456_v6 = vperm.slane %v3775_v1, 1  ;;  %vm4176_vm11 = vcmp.lt.s32.totalorder %v2833_v23, 112 }
 0x324   : > { %vm4177_vm12 = vmmov %vm4176_vm11 }
 0x325   : > { %v1197_v52 = vmul.f32 %v3224_v11, %v1185_v20  ;;  %v1198_v28 = vmul.f32 %v3224_v11, %v1186_v5  ;;  %v2292_v11 = vld [vmem:[#allocation10] sm:$0xff]  ;;  %vm4190_vm2 = vmmov %vm4176_vm11 }
 0x326   : > { %vm4191_vm3 = vmmov %vm4190_vm2 }
 0x327   : > { %v1201_v32 = vadd.f32 %v1197_v52, %v1162_v38  ;;  %v1202_v54 = vadd.f32 %v1198_v28, %v1163_v17  ;;  %v1455_v17 = vperm.slane %v3775_v1, 0  ;;  %v1319_v52 = vmul.f32 %v3307_v42, %v1303_v55 }
 0x329   : > { %v1241_v26 = vadd.f32 %v1237_v58, %v1201_v32  ;;  %v1242_v34 = vadd.f32 %v1238_v63, %v1202_v54 }
 0x32b   : > { %v1281_v21 = vadd.f32 %v1277_v44, %v1241_v26  ;;  %v1282_v41 = vadd.f32 %v1278_v61, %v1242_v34 }
 0x32d   : > { %v3706_v37 = vadd.f32 %v3231_v18, %v1281_v21  ;;  %v3709_v2 = vadd.f32 %v3231_v18, %v1282_v41  ;;  %v4169_v18 = vmov 9  }
 0x32f   : > { %1324 = vrot.lane.b32.xlu2 %v3706_v37, %s2536_s17  ;;  %1367 = vrot.lane.b32.xlu0 %v3709_v2, %s2558_s10 }
 0x330   : > { %1363 = vrot.lane.b32.xlu1 %v3706_v37, %s2558_s10  ;;  %s1912_s10 = sshll.u32 %s1909_s29, 4  ;;  %s1913_s10 = int_to_ptr.hbm [resolvable:$true] %s1912_s10 }
 0x337   : > { %1328 = vrot.lane.b32.xlu2 %v3709_v2, %s2536_s17  ;;  %1407 = vrot.lane.b32.xlu0 %v3709_v2, %s2531_s12 }
 0x338   : > { %1403 = vrot.lane.b32.xlu1 %v3706_v37, %s2531_s12 }
 0x33f   : > { %1608 = vperm.xlu2 %2235, %v2292_v11   ;;  %1446 = vrot.lane.b32.xlu0 %v3709_v2, %s2532_s30 }
 0x340   : > { %1442 = vrot.lane.b32.xlu1 %v3706_v37, %s2532_s30 }
 0x347   : > { %2237 = vset.pattern.permute.xlu2 %v4169_v18  ;;  %1485 = vrot.lane.b32.xlu0 %v3709_v2, %s2533_s23 }
 0x348   : > { %1481 = vrot.lane.b32.xlu1 %v3706_v37, %s2533_s23  ;;  %1635 = vperm.xlu2 %2237, %v2292_v11  }
 0x349   : > { %v1366_v39 = vpop.permute.xlu2 %1365 }
 0x34f   : > { %1524 = vrot.lane.b32.xlu0 %v3709_v2, %s4159_s16 }
 0x350   : > { %1520 = vrot.lane.b32.xlu1 %v3706_v37, %s4159_s16  ;;  %2239 = vset.pattern.permute.xlu2 %v4160_v8  ;;  %s1898_s16 = scalar_lea.sflag [#allocation4], %s2720_s14 }
 0x351   : > { %v1402_v22 = vpop.permute.xlu2 %1401  ;;  %1666 = vperm.xlu2 %2239, %v3195_v46  }
 0x357   : > { %1563 = vrot.lane.b32.xlu0 %v3709_v2, %s4163_s15 }
 0x358   : > { %1559 = vrot.lane.b32.xlu1 %v3706_v37, %s4163_s15  ;;  %s2459_s15 = sshra.s32 %s1913_s10, 4  ;;  %s2460_s15 = int_to_ptr.hbm [resolvable:$true] %s2459_s15 }
 0x359   : > { %v1406_v43 = vpop.permute.xlu2 %1405  ;;  %2241 = vset.pattern.permute.xlu2 %v4170_v50  ;;  %s2461_s12 = scalar_lea.hbm %s2460_s15, 32  ;;  %p2466_p11 = scmp.lt.s32.totalorder %s2460_s15, %s4080_s7 }
 0x35a   : > { %1682 = vperm.xlu2 %2241, %v2293_v27   ;;  %v3787_v48 = vsel %vm391_vm0, %v1402_v22, %v1406_v43  ;;  %v3791_v53 = vsel %vm391_vm0, %v1406_v43, %v1402_v22  ;;  %p2462_p1 = scmp.ne.s32.totalorder %s2460_s15, %s2461_s12  ;;  %p2467_p9 = scmp.lt.s32.totalorder %s2465_s21, %s2461_s12 }
 0x35b   : > { %v1420_v58 = vmul.f32 %v1416_v16, %v3791_v53  ;;  %v1421_v63 = vmul.f32 %v1417_v9, %v3787_v48 }
 0x35c   : > { %p2463_p4 = pnand %p2462_p1, %p2690_p5  ;;  %p2468_p2 = por %p2467_p9, %p2466_p11 }
 0x35d   : > { %v1432_v41 = vmul.f32 %v3345_v47, %v1420_v58 }
 0x35e   : > { %p2464_p8 = pneg %p2463_p4 }
 0x35f   : > { %1639 = vperm.xlu0 %2233, %v3195_v46   ;;  %v1298_v46 = vperm.slane %v3756_v62, 0 }
 0x360   : > { %1662 = vperm.xlu1 %2238, %v2292_v11   ;;  %v1433_v11 = vmul.f32 %v3345_v47, %v1421_v63  ;;  %v3844_v47 = vld [vmem:[#allocation8 + $0x37] ss:$8 sm:$0x3]  ;;  %p2469_p10 = pnand %p2468_p2, %p2464_p8 }
 0x361   : > { %v1362_v8 = vpop.permute.xlu0 %1361  ;;  %v1445_v15 = vpop.permute.xlu2 %1444  ;;  %v1302_v31 = vmul.f32 %v1298_v46, %v3576_v56 }
 0x362   : > { %v3750_v40 = vsel %vm1369_vm6, %v1362_v8, %v1366_v39  ;;  %v3754_v49 = vsel %vm1369_vm6, %v1366_v39, %v1362_v8  ;;  %v1323_v36 = vpop.permute.xlu1 %1322 }
 0x363   : > { %v1381_v30 = vmul.f32 %v1377_v4, %v3754_v49  ;;  %v1382_v56 = vmul.f32 %v1378_v33, %v3750_v40  ;;  %v1318_v28 = vmul.f32 %v3307_v42, %v1302_v31  ;;  %v3842_v31 = vld [vmem:[#allocation8 + $0x35] ss:$8 sm:$0x3] }
 0x365   : > { %v1393_v44 = vmul.f32 %v3330_v35, %v1381_v30  ;;  %v1394_v61 = vmul.f32 %v3330_v35, %v1382_v56  ;;  %v3852_v56 = vld [vmem:[#allocation8 + $0x40] ss:$8 sm:$0x3] }
 0x366   : > { %v1572_v63 = vperm.slane %v3852_v56, 0 }
 0x367   : > { %2242 = vset.pattern.permute.xlu0 %v4171_v45 }
 0x368   : > { %2240 = vset.pattern.permute.xlu1 %v4170_v50  ;;  %1694 = vperm.xlu0 %2242, %v2294_v57  }
 0x369   : > { %1678 = vperm.xlu1 %2240, %v2294_v57   ;;  %v1441_v0 = vpop.permute.xlu0 %1440  ;;  %v1484_v25 = vpop.permute.xlu2 %1483 }
 0x36a   : > { %v1327_v51 = vpop.permute.xlu1 %1326  ;;  %v1448_v20 = vsel %vm4172_vm7, %v1441_v0, %v1445_v15  ;;  %v1450_v5 = vsel %vm4173_vm8, %v1445_v15, %v1441_v0  ;;  %v1495_v0 = vperm.slane %v3842_v31, 1 }
 0x36b   : > { %v3801_v10 = vsel %vm530_vm5, %v1323_v36, %v1327_v51  ;;  %v3805_v38 = vsel %vm530_vm5, %v1327_v51, %v1323_v36  ;;  %v1459_v26 = vmul.f32 %v1455_v17, %v1450_v5  ;;  %v1460_v42 = vmul.f32 %v1456_v6, %v1448_v20 }
 0x36c   : > { %v1341_v59 = vmul.f32 %v1337_v29, %v3805_v38  ;;  %v1342_v3 = vmul.f32 %v1338_v7, %v3801_v10 }
 0x36d   : > { %v1471_v39 = vmul.f32 %v3359_v12, %v1459_v26  ;;  %v1472_v35 = vmul.f32 %v3359_v12, %v1460_v42 }
 0x36e   : > { %v1353_v32 = vmul.f32 %v3371_v60, %v1341_v59  ;;  %v1354_v54 = vmul.f32 %v3371_v60, %v1342_v3  ;;  %v1533_v59 = vperm.slane %v3844_v47, 0  ;;  %v1534_v3 = vperm.slane %v3844_v47, 1 }
 0x370   : > { %v1357_v34 = vadd.f32 %v1353_v32, %v1318_v28  ;;  %v1358_v21 = vadd.f32 %v1354_v54, %v1319_v52  ;;  %v3860_v28 = vld [vmem:[#allocation8 + $0x41] ss:$8 sm:$0x3]  ;;  %v1573_v32 = vperm.slane %v3852_v56, 1 }
 0x371   : > { %2243 = vset.pattern.permute.xlu1 %v4171_v45  ;;  %v1523_v36 = vpop.permute.xlu2 %1522  ;;  %v1480_v15 = vpop.permute.xlu0 %1479  ;;  %v1599_v42 = vperm.slane %v3860_v28, 0 }
 0x372   : > { %v1397_v18 = vadd.f32 %v1393_v44, %v1357_v34  ;;  %v1398_v60 = vadd.f32 %v1394_v61, %v1358_v21  ;;  %1698 = vperm.xlu1 %2243, %v2293_v27   ;;  %v1494_v27 = vperm.slane %v3842_v31, 0  ;;  %v1487_v12 = vsel %vm4174_vm9, %v1480_v15, %v1484_v25  ;;  %v3878_v21 = vld [vmem:[#allocation8 + $0x42] ss:$8 sm:$0x3] }
 0x373   : > { %v1489_v30 = vsel %vm4175_vm10, %v1484_v25, %v1480_v15  ;;  %v1499_v25 = vmul.f32 %v1495_v0, %v1487_v12  ;;  %v1600_v34 = vperm.slane %v3860_v28, 1  ;;  %v1603_v12 = vmul.f32 %v1599_v42, %v3801_v10  ;;  %v4198_v28 = vld [vmem:[#allocation26_spill] sm:$0xff] }
 0x374   : > { %v1436_v22 = vadd.f32 %v1432_v41, %v1397_v18  ;;  %v1437_v43 = vadd.f32 %v1433_v11, %v1398_v60  ;;  %v1498_v58 = vmul.f32 %v1494_v27, %v1489_v30  ;;  %v4180_v41 = vld [vmem:[#allocation23_spill] sm:$0xff] }
 0x375   : > { %v1511_v18 = vmul.f32 %v4180_v41, %v1499_v25  ;;  %v1604_v30 = vmul.f32 %v1600_v34, %v3805_v38 }
 0x376   : > { %v1475_v50 = vadd.f32 %v1471_v39, %v1436_v22  ;;  %v1476_v8 = vadd.f32 %v1472_v35, %v1437_v43  ;;  %v1510_v11 = vmul.f32 %v4180_v41, %v1498_v58  ;;  %v3886_v22 = vpop.permute.xlu1 %1612  ;;  %v4181_v43 = vld [vmem:[#allocation24_spill] sm:$0xff] }
 0x379   : > { %v1562_v57 = vpop.permute.xlu2 %1561  ;;  %v1519_v55 = vpop.permute.xlu0 %1518 }
 0x37a   : > { %v1526_v5 = vsel %vm4176_vm11, %v1519_v55, %v1523_v36  ;;  %v1528_v52 = vsel %vm4177_vm12, %v1523_v36, %v1519_v55  ;;  %v1627_v55 = vperm.slane %v3878_v21, 1 }
 0x37b   : > { %v1537_v61 = vmul.f32 %v1533_v59, %v1526_v5  ;;  %v1538_v26 = vmul.f32 %v1534_v3, %v1528_v52  ;;  %v1515_v5 = vadd.f32 %v1511_v18, %v1476_v8  ;;  %v4182_v52 = vld [vmem:[#allocation25_spill] sm:$0xff] }
 0x37c   : > { %v1631_v10 = vmul.f32 %v1627_v55, %v3754_v49 }
 0x37d   : > { %v1549_v36 = vmul.f32 %v4181_v43, %v1537_v61  ;;  %v1550_v15 = vmul.f32 %v4181_v43, %v1538_v26 }
 0x381   : > { %v1558_v20 = vpop.permute.xlu0 %1557 }
 0x382   : > { %v1565_v54 = vsel %vm4178_vm13, %v1558_v20, %v1562_v57  ;;  %v1567_v44 = vsel %vm4179_vm14, %v1562_v57, %v1558_v20  ;;  %v1626_v57 = vperm.slane %v3878_v21, 0  ;;  %v1514_v20 = vadd.f32 %v1510_v11, %v1475_v50 }
 0x383   : > { %v1576_v60 = vmul.f32 %v1572_v63, %v1565_v54  ;;  %v1577_v39 = vmul.f32 %v1573_v32, %v1567_v44  ;;  %v1554_v44 = vadd.f32 %v1550_v15, %v1515_v5 }
 0x384   : > { %v1553_v54 = vadd.f32 %v1549_v36, %v1514_v20  ;;  %v1630_v41 = vmul.f32 %v1626_v57, %v3750_v40 }
 0x385   : > { %v1588_v58 = vmul.f32 %v4182_v52, %v1576_v60  ;;  %v1589_v25 = vmul.f32 %v4182_v52, %v1577_v39 }
 0x387   : > { %v1592_v43 = vadd.f32 %v1588_v58, %v1553_v54  ;;  %v1593_v38 = vadd.f32 %v1589_v25, %v1554_v44 }
 0x389   : > { %v3840_v45 = vpop.permute.xlu2 %1324 }
 0x391   : > { %v1329_v51 = vpop.permute.xlu2 %1328 }
 0x392   : > { %v1331_v49 = vsel %vm530_vm5, %v3840_v45, %v1329_v51  ;;  %v1333_v5 = vsel %vm530_vm5, %v1329_v51, %v3840_v45  ;;  %v1304_v45 = vmul.f32 %v1298_v46, %v3706_v37  ;;  %v1305_v51 = vmul.f32 %v1299_v13, %v3709_v2  ;;  %v4183_v37 = vld [vmem:[#allocation18_spill] sm:$0xff]  ;;  %vm4184_vm5 = vmmov %vm4172_vm7 }
 0x393   : > { %v1343_v44 = vmul.f32 %v1337_v29, %v1333_v5  ;;  %vm4185_vm15 = vmmov %vm4184_vm5  ;;  %v1606_v47 = vmul.f32 %v1600_v34, %v1333_v5  ;;  %vm4199_vm7 = vcmask 130048  }
 0x394   : > { %vm4200_vm8 = vmmov %vm4199_vm7 }
 0x395   : > { %v1355_v46 = vmul.f32 %v4183_v37, %v1343_v44  ;;  %v1618_v23 = vmul.f32 %v3886_v22, %v1606_v47 }
 0x399   : > { %v1609_v35 = vpop.permute.xlu2 %1608 }
 0x39a   : > { %v1615_v61 = vmul.f32 %v1609_v35, %v1603_v12  ;;  %v1616_v26 = vmul.f32 %v1609_v35, %v1604_v30 }
 0x39c   : > { %v1619_v18 = vadd.f32 %v1615_v61, %v1592_v43  ;;  %v1620_v60 = vadd.f32 %v1616_v26, %v1593_v38  ;;  %v1344_v61 = vmul.f32 %v1338_v7, %v1331_v49  ;;  %v4187_v43 = vld [vmem:[#allocation17_spill] sm:$0xff] }
 0x39e   : > { %v1356_v2 = vmul.f32 %v4183_v37, %v1344_v61  ;;  %v4194_v37 = vld [vmem:[#allocation21_spill] sm:$0xff] }
 0x3a1   : > { %v1368_v50 = vpop.permute.xlu0 %1367 }
 0x3a2   : > { %v1364_v8 = vpop.permute.xlu1 %1363  ;;  %v1636_v11 = vpop.permute.xlu2 %1635 }
 0x3a3   : > { %v1642_v39 = vmul.f32 %v1636_v11, %v1630_v41  ;;  %v1643_v36 = vmul.f32 %v1636_v11, %v1631_v10  ;;  %v3918_v58 = vsel %vm1369_vm6, %v1364_v8, %v1368_v50  ;;  %v3922_v25 = vsel %vm1369_vm6, %v1368_v50, %v1364_v8  ;;  %vm4197_vm6 = vmmov %vm4196_vm4 }
 0x3a4   : > { %v1383_v26 = vmul.f32 %v1377_v4, %v3922_v25  ;;  %v1384_v41 = vmul.f32 %v1378_v33, %v3918_v58  ;;  %v1320_v4 = vmul.f32 %v4186_v19, %v1304_v45  ;;  %v1321_v33 = vmul.f32 %v4186_v19, %v1305_v51 }
 0x3a5   : > { %v3906_v15 = vadd.f32 %v1642_v39, %v1619_v18  ;;  %v3908_v35 = vadd.f32 %v1643_v36, %v1620_v60  ;;  %v1633_v56 = vmul.f32 %v1627_v55, %v3922_v25 }
 0x3a6   : > { %v1395_v38 = vmul.f32 %v4187_v43, %v1383_v26  ;;  %v1396_v50 = vmul.f32 %v4187_v43, %v1384_v41  ;;  %v1359_v14 = vadd.f32 %v1355_v46, %v1320_v4 }
 0x3a9   : > { %v1408_v12 = vpop.permute.xlu0 %1407 }
 0x3aa   : > { %v1404_v30 = vpop.permute.xlu1 %1403 }
 0x3ab   : > { %v3942_v24 = vsel %vm391_vm0, %v1404_v30, %v1408_v12  ;;  %v3946_v29 = vsel %vm391_vm0, %v1408_v12, %v1404_v30  ;;  %vm4188_vm0 = vmmov %vm4174_vm9  ;;  %v4192_v30 = vld [vmem:[#allocation19_spill] sm:$0xff] }
 0x3ac   : > { %v1422_v7 = vmul.f32 %v1416_v16, %v3946_v29  ;;  %v1423_v10 = vmul.f32 %v1417_v9, %v3942_v24  ;;  %vm4189_vm1 = vmmov %vm4188_vm0  ;;  %v1360_v9 = vadd.f32 %v1356_v2, %v1321_v33 }
 0x3b1   : > { %v1447_v40 = vpop.permute.xlu0 %1446 }
 0x3b2   : > { %v1443_v20 = vpop.permute.xlu1 %1442 }
 0x3b3   : > { %v1449_v62 = vsel %vm4184_vm5, %v1443_v20, %v1447_v40  ;;  %v1451_v13 = vsel %vm4185_vm15, %v1447_v40, %v1443_v20  ;;  %v1434_v40 = vmul.f32 %v4192_v30, %v1422_v7  ;;  %v1435_v20 = vmul.f32 %v4192_v30, %v1423_v10 }
 0x3b4   : > { %v1461_v60 = vmul.f32 %v1455_v17, %v1451_v13  ;;  %v1462_v16 = vmul.f32 %v1456_v6, %v1449_v62  ;;  %v1399_v17 = vadd.f32 %v1395_v38, %v1359_v14  ;;  %v1400_v6 = vadd.f32 %v1396_v50, %v1360_v9  ;;  %v4195_v13 = vld [vmem:[#allocation22_spill] sm:$0xff] }
 0x3b6   : > { %v1438_v26 = vadd.f32 %v1434_v40, %v1399_v17  ;;  %v1439_v41 = vadd.f32 %v1435_v20, %v1400_v6 }
 0x3b9   : > { %v1486_v52 = vpop.permute.xlu0 %1485 }
 0x3ba   : > { %v1482_v54 = vpop.permute.xlu1 %1481 }
 0x3bb   : > { %v1488_v8 = vsel %vm4188_vm0, %v1482_v54, %v1486_v52  ;;  %v1490_v11 = vsel %vm4189_vm1, %v1486_v52, %v1482_v54  ;;  %v4193_v54 = vld [vmem:[#allocation20_spill] sm:$0xff] }
 0x3bc   : > { %v1500_v52 = vmul.f32 %v1494_v27, %v1490_v11  ;;  %v1501_v1 = vmul.f32 %v1495_v0, %v1488_v8  ;;  %v1473_v44 = vmul.f32 %v4193_v54, %v1461_v60  ;;  %v1474_v61 = vmul.f32 %v4193_v54, %v1462_v16  ;;  %v1651_v0 = vld [vmem:[#allocation8 + $0x43] ss:$8 sm:$0x3] }
 0x3bd   : > { %v1653_v8 = vperm.slane %v1651_v0, 0  ;;  %v1654_v11 = vperm.slane %v1651_v0, 1  ;;  %v1632_v60 = vmul.f32 %v1626_v57, %v3918_v58 }
 0x3be   : > { %v1512_v46 = vmul.f32 %v4194_v37, %v1500_v52  ;;  %v1513_v27 = vmul.f32 %v4194_v37, %v1501_v1  ;;  %v1477_v2 = vadd.f32 %v1473_v44, %v1438_v26  ;;  %v1478_v62 = vadd.f32 %v1474_v61, %v1439_v41  ;;  %v2072_v41 = vld [vmem:[#allocation7] sm:$0xff] }
 0x3bf   : > { %v1657_v16 = vmul.f32 %v1653_v8, %v3787_v48  ;;  %v1659_v14 = vmul.f32 %v1653_v8, %v3942_v24  ;;  %v1660_v9 = vmul.f32 %v1654_v11, %v3946_v29 }
 0x3c0   : > { %v1516_v10 = vadd.f32 %v1512_v46, %v1477_v2  ;;  %v1517_v43 = vadd.f32 %v1513_v27, %v1478_v62 }
 0x3c1   : > { %v1525_v18 = vpop.permute.xlu0 %1524 }
 0x3c2   : > { %v1521_v39 = vpop.permute.xlu1 %1520 }
 0x3c3   : > { %v1527_v36 = vsel %vm4190_vm2, %v1521_v39, %v1525_v18  ;;  %v1529_v12 = vsel %vm4191_vm3, %v1525_v18, %v1521_v39  ;;  %v1658_v39 = vmul.f32 %v1654_v11, %v3791_v53 }
 0x3c4   : > { %v1539_v45 = vmul.f32 %v1533_v59, %v1527_v36  ;;  %v1540_v51 = vmul.f32 %v1534_v3, %v1529_v12  ;;  %v1605_v59 = vmul.f32 %v1599_v42, %v1331_v49  ;;  %v1667_v36 = vpop.permute.xlu2 %1666 }
 0x3c5   : > { %v1671_v53 = vmul.f32 %v1667_v36, %v1659_v14  ;;  %v1672_v1 = vmul.f32 %v1667_v36, %v1660_v9 }
 0x3c6   : > { %v1551_v19 = vmul.f32 %v4195_v13, %v1539_v45  ;;  %v1552_v4 = vmul.f32 %v4195_v13, %v1540_v51  ;;  %v1617_v18 = vmul.f32 %v3886_v22, %v1605_v59 }
 0x3c8   : > { %v1555_v42 = vadd.f32 %v1551_v19, %v1516_v10  ;;  %v1556_v49 = vadd.f32 %v1552_v4, %v1517_v43 }
 0x3c9   : > { %v1564_v31 = vpop.permute.xlu0 %1563 }
 0x3ca   : > { %v1560_v33 = vpop.permute.xlu1 %1559 }
 0x3cb   : > { %v1566_v3 = vsel %vm4196_vm4, %v1560_v33, %v1564_v31  ;;  %v1568_v7 = vsel %vm4197_vm6, %v1564_v31, %v1560_v33 }
 0x3cc   : > { %v1578_v38 = vmul.f32 %v1572_v63, %v1566_v3  ;;  %v1579_v50 = vmul.f32 %v1573_v32, %v1568_v7  ;;  %v1683_v29 = vpop.permute.xlu2 %1682 }
 0x3ce   : > { %v1590_v34 = vmul.f32 %v4198_v28, %v1578_v38  ;;  %v1591_v5 = vmul.f32 %v4198_v28, %v1579_v50 }
 0x3d0   : > { %v1594_v63 = vadd.f32 %v1590_v34, %v1555_v42  ;;  %v1595_v32 = vadd.f32 %v1591_v5, %v1556_v49 }
 0x3d1   : > { %v1640_v22 = vpop.permute.xlu0 %1639 }
 0x3d2   : > { %v1621_v12 = vadd.f32 %v1617_v18, %v1594_v63  ;;  %v1622_v30 = vadd.f32 %v1618_v23, %v1595_v32  ;;  %v1644_v40 = vmul.f32 %v1640_v22, %v1632_v60  ;;  %v1645_v57 = vmul.f32 %v1640_v22, %v1633_v56  ;;  %v1663_v58 = vpop.permute.xlu1 %1662 }
 0x3d3   : > { %v1669_v20 = vmul.f32 %v1663_v58, %v1657_v16  ;;  %v1670_v21 = vmul.f32 %v1663_v58, %v1658_v39 }
 0x3d4   : > { %v1648_v55 = vadd.f32 %v1644_v40, %v1621_v12  ;;  %v1649_v25 = vadd.f32 %v1645_v57, %v1622_v30 }
 0x3d5   : > { %v1674_v52 = vadd.f32 %v1670_v21, %v3908_v35  ;;  %v1673_v48 = vadd.f32 %v1669_v20, %v3906_v15 }
 0x3d6   : > { %v1675_v24 = vadd.f32 %v1671_v53, %v1648_v55  ;;  %v1676_v17 = vadd.f32 %v1672_v1, %v1649_v25 }
 0x3d8   : > { %v1687_v54 = vadd.f32 %v1683_v29, %v1675_v24  ;;  %v1688_v44 = vadd.f32 %v1683_v29, %v1676_v17 }
 0x3da   : > { %v1695_v15 = vpop.permute.xlu0 %1694 }
 0x3db   : > { %v1679_v6 = vpop.permute.xlu1 %1678 }
 0x3dc   : > { %v1685_v61 = vadd.f32 %v1679_v6, %v1673_v48  ;;  %v1686_v45 = vadd.f32 %v1679_v6, %v1674_v52 }
 0x3de   : > { %v1691_v51 = vpack.c.bf16 %v1687_v54, %v1685_v61  ;;  %v1692_v26 = vpack.c.bf16 %v1688_v44, %v1686_v45 }
 0x3e0   : > { %1716 = vmatpush.bf16.msra.mxu2 %v1691_v51  ;;  %1730 = vmatpush.bf16.msra.mxu3 %v1692_v26 }
 0x3e3   : > { %2055 = vmatmul.msk.bf16.vlgmr.msra.gmra.mxu2 %vm4199_vm7, %v2072_v41  ;;  %2056 = vmatmul.msk.bf16.vlgmr.msra.gmra.mxu3 %vm4200_vm8, %v2072_v41 }
 0x3e4   : > { %v1699_v2 = vpop.permute.xlu1 %1698 }
 0x466   : > { %v1718_v35 = vpop.f32.mrf.mxu2  ;;  %v1732_v37 = vpop.f32.mrf.mxu3 }
 0x467   : > { %v1719_v46 = vadd.f32 %v1718_v35, %v1695_v15  ;;  %v1733_v27 = vadd.f32 %v1732_v37, %v1695_v15 }
 0x469   : > { %v2057_v31 = vmul.f32 -1.442695, %v1719_v46  ;;  %v2058_v0 = vmul.f32 -1.442695, %v1733_v27 }
 0x46b   : > { %2260 = vpow2.f32 %v2057_v31 }
 0x46c   : > { %2262 = vpow2.f32 %v2058_v0 }
 0x46e   : > { %v1734_v62 = vpop.f32.mrf.mxu3  ;;  %v1720_v13 = vpop.f32.mrf.mxu2 }
 0x46f   : > { %v4022_v19 = vadd.f32 %v1734_v62, %v1699_v2  ;;  %v4024_v4 = vadd.f32 %v1720_v13, %v1699_v2 }
 0x471   : > { %v2261_v33 = vpop.eup %2260  ;;  %v2060_v59 = vmul.f32 -1.442695, %v4022_v19  ;;  %v2059_v7 = vmul.f32 -1.442695, %v4024_v4 }
 0x472   : > { %v2263_v47 = vpop.eup %2262  ;;  %v1749_v3 = vadd.f32 1.0, %v2261_v33 }
 0x473   : > { %v1750_v10 = vadd.f32 1.0, %v2263_v47  ;;  %2264 = vpow2.f32 %v2060_v59 }
 0x474   : > { %2266 = vrcp.f32 %v1749_v3  ;;  %v1762_v5 = vand.u32 2147483647, %v1749_v3  ;;  %v1764_v18 = vand.u32 2147483648, %v1749_v3  ;;  %vm1758_vm11 = vweird.f32 %v1749_v3 }
 0x475   : > { %2268 = vrcp.f32 %v1750_v10  ;;  %v1779_v56 = vand.u32 2147483648, %v1750_v10  ;;  %v1777_v32 = vand.u32 2147483647, %v1750_v10  ;;  %vm1773_vm13 = vweird.f32 %v1750_v10 }
 0x476   : > { %2270 = vpow2.f32 %v2059_v7  ;;  %v1765_v14 = vor.u32 1.1754944e-38, %v1764_v18  ;;  %vm1763_vm14 = vcmp.eq.f32.partialorder %v1762_v5, 8.507059e+37 }
 0x477   : > { %v1780_v22 = vor.u32 1.1754944e-38, %v1779_v56  ;;  %vm1778_vm15 = vcmp.eq.f32.partialorder %v1777_v32, 8.507059e+37 }
 0x479   : > { %v2265_v43 = vpop.eup %2264 }
 0x47a   : > { %v2267_v38 = vpop.eup %2266  ;;  %v1752_v50 = vadd.f32 1.0, %v2265_v43 }
 0x47b   : > { %v2269_v8 = vpop.eup %2268  ;;  %v1754_v11 = vmul.f32 %v2267_v38, %v1749_v3  ;;  %vm1759_vm9 = vweird.f32 %v2267_v38 }
 0x47c   : > { %v2271_v42 = vpop.eup %2270  ;;  %v1769_v49 = vmul.f32 %v2269_v8, %v1750_v10  ;;  %2272 = vrcp.f32 %v1752_v50  ;;  %vm1774_vm10 = vweird.f32 %v2269_v8  ;;  %vm1760_vm12 = vmor %vm1758_vm11, %vm1759_vm9  ;;  %v1809_v55 = vand.u32 2147483648, %v1752_v50 }
 0x47d   : > { %v1755_v28 = vsub.f32 1.0, %v1754_v11  ;;  %v1751_v34 = vadd.f32 1.0, %v2271_v42  ;;  %vm1775_vm5 = vmor %vm1773_vm13, %vm1774_vm10  ;;  %v1807_v1 = vand.u32 2147483647, %v1752_v50  ;;  %vm1803_vm1 = vweird.f32 %v1752_v50 }
 0x47e   : > { %v1770_v23 = vsub.f32 1.0, %v1769_v49  ;;  %v1810_v6 = vor.u32 1.1754944e-38, %v1809_v55 }
 0x47f   : > { %v1756_v60 = vmul.f32 %v2267_v38, %v1755_v28  ;;  %2274 = vrcp.f32 %v1751_v34  ;;  %v1794_v54 = vand.u32 2147483648, %v1751_v34  ;;  %v1792_v61 = vand.u32 2147483647, %v1751_v34 }
 0x480   : > { %v1771_v63 = vmul.f32 %v2269_v8, %v1770_v23  ;;  %vm1808_vm4 = vcmp.eq.f32.partialorder %v1807_v1, 8.507059e+37  ;;  %vm1788_vm6 = vweird.f32 %v1751_v34 }
 0x481   : > { %v1757_v16 = vadd.f32 %v2267_v38, %v1756_v60  ;;  %v1795_v15 = vor.u32 1.1754944e-38, %v1794_v54  ;;  %vm1793_vm8 = vcmp.eq.f32.partialorder %v1792_v61, 8.507059e+37 }
 0x482   : > { %v2273_v39 = vpop.eup %2272  ;;  %v1772_v9 = vadd.f32 %v2269_v8, %v1771_v63 }
 0x483   : > { %v1761_v36 = vsel %vm1760_vm12, %v2267_v38, %v1757_v16  ;;  %v1799_v12 = vmul.f32 %v2273_v39, %v1752_v50  ;;  %vm1804_vm0 = vweird.f32 %v2273_v39 }
 0x484   : > { %v1766_v30 = vsel %vm1763_vm14, %v1765_v14, %v1761_v36  ;;  %v1776_v40 = vsel %vm1775_vm5, %v2269_v8, %v1772_v9  ;;  %vm1805_vm2 = vmor %vm1803_vm1, %vm1804_vm0 }
 0x485   : > { %v2275_v57 = vpop.eup %2274  ;;  %v1813_v58 = vmul.f32 %v1766_v30, %v1719_v46  ;;  %v1781_v20 = vsel %vm1778_vm15, %v1780_v22, %v1776_v40  ;;  %v1800_v21 = vsub.f32 1.0, %v1799_v12 }
 0x486   : > { %v1814_v25 = vmul.f32 %v1781_v20, %v1733_v27  ;;  %v1784_v52 = vmul.f32 %v2275_v57, %v1751_v34  ;;  %vm1789_vm3 = vweird.f32 %v2275_v57 }
 0x487   : > { %v2061_v48 = vmul.f32 -1.442695, %v1813_v58  ;;  %v1801_v53 = vmul.f32 %v2273_v39, %v1800_v21  ;;  %vm1790_vm7 = vmor %vm1788_vm6, %vm1789_vm3 }
 0x488   : > { %v2062_v24 = vmul.f32 -1.442695, %v1814_v25  ;;  %v1785_v17 = vsub.f32 1.0, %v1784_v52 }
 0x489   : > { %2276 = vpow2.f32 %v2061_v48  ;;  %v1802_v29 = vadd.f32 %v2273_v39, %v1801_v53 }
 0x48a   : > { %2278 = vpow2.f32 %v2062_v24  ;;  %v1786_v44 = vmul.f32 %v2275_v57, %v1785_v17 }
 0x48b   : > { %v1806_v45 = vsel %vm1805_vm2, %v2273_v39, %v1802_v29 }
 0x48c   : > { %v1811_v51 = vsel %vm1808_vm4, %v1810_v6, %v1806_v45  ;;  %v1787_v26 = vadd.f32 %v2275_v57, %v1786_v44 }
 0x48d   : > { %v1816_v41 = vmul.f32 %v1811_v51, %v4022_v19 }
 0x48e   : > { %v1791_v35 = vsel %vm1790_vm7, %v2275_v57, %v1787_v26 }
 0x48f   : > { %v2277_v37 = vpop.eup %2276  ;;  %v2064_v46 = vmul.f32 -1.442695, %v1816_v41  ;;  %v1796_v27 = vsel %vm1793_vm8, %v1795_v15, %v1791_v35 }
 0x490   : > { %v2279_v31 = vpop.eup %2278  ;;  %v1829_v0 = vadd.f32 1.0, %v2277_v37  ;;  %v1815_v2 = vmul.f32 %v1796_v27, %v4024_v4 }
 0x491   : > { %v1830_v62 = vadd.f32 1.0, %v2279_v31  ;;  %2280 = vpow2.f32 %v2064_v46 }
 0x492   : > { %2282 = vrcp.f32 %v1829_v0  ;;  %v2063_v13 = vmul.f32 -1.442695, %v1815_v2  ;;  %v1842_v38 = vand.u32 2147483647, %v1829_v0  ;;  %v1844_v50 = vand.u32 2147483648, %v1829_v0 }
 0x493   : > { %2284 = vrcp.f32 %v1830_v62  ;;  %v1859_v4 = vand.u32 2147483648, %v1830_v62  ;;  %v1857_v28 = vand.u32 2147483647, %v1830_v62  ;;  %vm1838_vm11 = vweird.f32 %v1829_v0 }
 0x494   : > { %2286 = vpow2.f32 %v2063_v13  ;;  %v1845_v18 = vor.u32 1.1754944e-38, %v1844_v50  ;;  %vm1853_vm13 = vweird.f32 %v1830_v62  ;;  %vm1843_vm14 = vcmp.eq.f32.partialorder %v1842_v38, 8.507059e+37 }
 0x495   : > { %v1860_v56 = vor.u32 1.1754944e-38, %v1859_v4  ;;  %vm1858_vm15 = vcmp.eq.f32.partialorder %v1857_v28, 8.507059e+37 }
 0x497   : > { %v2281_v33 = vpop.eup %2280 }
 0x498   : > { %v2283_v59 = vpop.eup %2282  ;;  %v1832_v19 = vadd.f32 1.0, %v2281_v33 }
 0x499   : > { %v2285_v47 = vpop.eup %2284  ;;  %v1834_v3 = vmul.f32 %v2283_v59, %v1829_v0  ;;  %vm1839_vm9 = vweird.f32 %v2283_v59 }
 0x49a   : > { %v1849_v7 = vmul.f32 %v2285_v47, %v1830_v62  ;;  %2288 = vrcp.f32 %v1832_v19  ;;  %v2287_v43 = vpop.eup %2286  ;;  %vm1854_vm10 = vweird.f32 %v2285_v47  ;;  %vm1840_vm12 = vmor %vm1838_vm11, %vm1839_vm9  ;;  %v1889_v9 = vand.u32 2147483648, %v1832_v19 }
 0x49b   : > { %v1835_v10 = vsub.f32 1.0, %v1834_v3  ;;  %v1831_v42 = vadd.f32 1.0, %v2287_v43  ;;  %vm1855_vm5 = vmor %vm1853_vm13, %vm1854_vm10  ;;  %v1887_v12 = vand.u32 2147483647, %v1832_v19  ;;  %vm1883_vm1 = vweird.f32 %v1832_v19 }
 0x49c   : > { %v1850_v8 = vsub.f32 1.0, %v1849_v7  ;;  %v1890_v57 = vor.u32 1.1754944e-38, %v1889_v9 }
 0x49d   : > { %v1836_v11 = vmul.f32 %v2283_v59, %v1835_v10  ;;  %2290 = vrcp.f32 %v1831_v42  ;;  %vm1888_vm3 = vcmp.eq.f32.partialorder %v1887_v12, 8.507059e+37  ;;  %v1874_v21 = vand.u32 2147483648, %v1831_v42 }
 0x49e   : > { %v1851_v49 = vmul.f32 %v2285_v47, %v1850_v8  ;;  %v1872_v52 = vand.u32 2147483647, %v1831_v42  ;;  %vm1868_vm6 = vweird.f32 %v1831_v42 }
 0x49f   : > { %v1837_v34 = vadd.f32 %v2283_v59, %v1836_v11  ;;  %v1875_v53 = vor.u32 1.1754944e-38, %v1874_v21 }
 0x4a0   : > { %v2289_v5 = vpop.eup %2288  ;;  %v1852_v23 = vadd.f32 %v2285_v47, %v1851_v49  ;;  %vm1873_vm8 = vcmp.eq.f32.partialorder %v1872_v52, 8.507059e+37 }
 0x4a1   : > { %v1841_v60 = vsel %vm1840_vm12, %v2283_v59, %v1837_v34  ;;  %v1879_v63 = vmul.f32 %v2289_v5, %v1832_v19  ;;  %vm1884_vm0 = vweird.f32 %v2289_v5 }
 0x4a2   : > { %v1846_v32 = vsel %vm1843_vm14, %v1845_v18, %v1841_v60  ;;  %v1856_v16 = vsel %vm1855_vm5, %v2285_v47, %v1852_v23  ;;  %vm1885_vm2 = vmor %vm1883_vm1, %vm1884_vm0 }
 0x4a3   : > { %1893 = vst [vmem:[%s4032_s22] sm:$0xff] %v1846_v32  ;;  %v1861_v39 = vsel %vm1858_vm15, %v1860_v56, %v1856_v16  ;;  %v1880_v14 = vsub.f32 1.0, %v1879_v63  ;;  %v2291_v36 = vpop.eup %2290 }
 0x4a4   : > { %1894 = vst [vmem:[%s4032_s22 + $0x8] sm:$0xff] %v1861_v39  ;;  %v1864_v30 = vmul.f32 %v2291_v36, %v1831_v42  ;;  %vm1869_vm4 = vweird.f32 %v2291_v36 }
 0x4a5   : > { %v1881_v22 = vmul.f32 %v2289_v5, %v1880_v14  ;;  %vm1870_vm7 = vmor %vm1868_vm6, %vm1869_vm4 }
 0x4a6   : > { %v1865_v58 = vsub.f32 1.0, %v1864_v30 }
 0x4a7   : > { %v1882_v40 = vadd.f32 %v2289_v5, %v1881_v22 }
 0x4a8   : > { %v1866_v25 = vmul.f32 %v2291_v36, %v1865_v58 }
 0x4a9   : > { %v1886_v20 = vsel %vm1885_vm2, %v2289_v5, %v1882_v40 }
 0x4aa   : > { %v1891_v55 = vsel %vm1888_vm3, %v1890_v57, %v1886_v20  ;;  %v1867_v48 = vadd.f32 %v2291_v36, %v1866_v25 }
 0x4ab   : > { %1896 = vst [vmem:[%s4032_s22 + $0x18] sm:$0xff] %v1891_v55 }
 0x4ac   : > { %v1871_v1 = vsel %vm1870_vm7, %v2291_v36, %v1867_v48 }
 0x4ad   : > { %v1876_v24 = vsel %vm1873_vm8, %v1875_v53, %v1871_v1 }
 0x4ae   : > { %1895 = vst [vmem:[%s4032_s22 + $0x10] sm:$0xff] %v1876_v24 }
 0x4af   : > { %2472 = shalt.err (!%p2469_p10)
}
 0x4b0   : > { %s2559_s14 = smov 256  }
 0x4b1   : > { %2092 = dma.vmem_to_hbm [thread:$0]  (%p2690_p5), %s1911_s28, 512, %s1913_s10, %s1898_s16, %s2559_s14, %s2559_s14, %s2533_s23  }
 0x4b2 PF: > { %s1927_s22 = sand.u32 1, %s2507_s24   ;;  %p4202_p12 = scmp.ge.s32.totalorder %s2519_s27, 2 }
 0x4b3   : > { %s1928_s9 = scalar_lea.sflag [#allocation4], %s1927_s22 }
 0x4b4   : > { %p2112_p13 = pnand %p4202_p12, %p2635_p6 }
 0x4b6   : > { %p2113_p0 = pneg %p2112_p13 }
 0x4b8   : > { %2502 = dma.done.wait (%p2113_p0), %s1928_s9, 512  }
 0x4b9   : > { %2504 = vsyncadd (%p2113_p0), %s1928_s9, 4294966784  ;;  %p22_p3 = scmp.ge.s32.totalorder %s2677_s11, 4   ;;  %s4203_s24 = smov %s2511_s25 }
 0x4ba   : > { %s4204_s25 = smov %s2515_s26  ;;  %s4205_s26 = smov %s2686_s19 }
 0x4bb   : > { %s4206_s27 = smov %s2677_s11  ;;  %24 = sbr.rel (!%p22_p3) target bundleno = 9 (0x9), region = 144 }
 0x4c0   :  { %1934 = vsyncpa [#allocation3], 1 }
 0x4c1   :  { %1936 = vsyncpa [#allocation3 + $0x1], 1 }
 0x4c2   :  { %1937 = vsyncpa [#allocation6], 1 }
 0x4c3   :  { %1938 = vsyncpa [#allocation9], 1 }
 0x4c4   :  { %1939 = vsyncpa [#allocation4], 1 }
 0x4c5   :  { %1941 = vsyncpa [#allocation4 + $0x1], 1 }

</bundles_post_ra>
